<compile_context>
chip_gen: v7x
topology: tpu7x:2x2x1
jax: 0.10.0
libtpu: 0.0.40
codegen_flags: <defaults>
</compile_context>

<pallas_src>
import jax
import jax.numpy as jnp
from jax import lax
from jax.experimental import pallas as pl
from jax.experimental.pallas import tpu as pltpu


# ----------------------------------------------------------------------------
# Fused decoder kernel
# ----------------------------------------------------------------------------
def _make_decoder_kernel(input_shape, layer_dims):
    """input_shape=(C0,H0,W0); layer_dims=[(H,W,Cin,Cout), ...] per conv layer."""
    C0, H0, W0 = input_shape
    n_layers = len(layer_dims)

    def kernel(x_ref, wd_ref, bd_ref, *refs):
        o_ref = refs[-1]

        # ---- dense + ReLU: one MXU matmul; columns pre-permuted to NHWC ----
        h = jnp.dot(x_ref[0], wd_ref[...], preferred_element_type=jnp.float32)
        h = jnp.maximum(h + bd_ref[...], 0.0)                     # (1, H0*W0*C0)

        # Un-flatten (1, F) -> (H0, W0, C0) using lane slices + sublane concat
        # (avoids a minor-dim-changing reshape).
        pieces = [h[:, j * C0:(j + 1) * C0] for j in range(H0 * W0)]
        act = jnp.concatenate(pieces, axis=0).reshape(H0, W0, C0)

        # ---- ConvTranspose2d(k=4, s=2, p=1) stack, polyphase/im2col form ----
        for li in range(n_layers):
            H, W, Cin, Cout = layer_dims[li]
            w_ref, b_ref = refs[2 * li], refs[2 * li + 1]

            # zero-pad by 1 on every spatial side (concat-based, no scatter).
            zr = jnp.zeros((1, W, Cin), jnp.float32)
            zc = jnp.zeros((H + 2, 1, Cin), jnp.float32)
            xp = jnp.concatenate([zr, act, zr], axis=0)           # (H+2, W,   Cin)
            xp = jnp.concatenate([zc, xp, zc], axis=1)            # (H+2, W+2, Cin)

            # 3x3-window im2col -> a single matmul with contraction depth 9*Cin.
            taps = [xp[r:r + H, c:c + W, :] for r in range(3) for c in range(3)]
            patches = jnp.concatenate(taps, axis=-1).reshape(H * W, 9 * Cin)
            y = jnp.dot(patches, w_ref[...],
                        preferred_element_type=jnp.float32) + b_ref[...]
            if li < n_layers - 1:
                y = jnp.maximum(y, 0.0)                           # ReLU between layers

            # Interleave the 4 output phases: (H*W, 4*Cout) -> (2H, 2W, Cout).
            # Column blocks are ordered k = ph*2 + pw (matching the weight pack).
            blk = [y[:, k * Cout:(k + 1) * Cout].reshape(H, W, Cout)
                   for k in range(4)]
            rows = []
            for ph in range(2):
                z = jnp.concatenate([blk[2 * ph][:, :, None, :],
                                     blk[2 * ph + 1][:, :, None, :]],
                                    axis=2)                       # (H, W, 2, Cout)
                rows.append(z.reshape(H, 2 * W, Cout)[:, None, :, :])
            act = jnp.concatenate(rows, axis=1).reshape(2 * H, 2 * W, Cout)

        o_ref[0] = act.astype(o_ref.dtype)

    return kernel


# ----------------------------------------------------------------------------
# One-time host-side parameter packing (hoisted out of the forward path)
# ----------------------------------------------------------------------------
def prepare_params(w_dense, b_dense, conv_params, input_shape):
    C0, H0, W0 = input_shape
    F, z_dim = w_dense.shape

    # Dense: (out,in) -> (in,out) with columns permuted so the kernel's
    # (H0*W0, C0) un-flatten directly yields the NHWC activation.
    wd = jnp.transpose(
        w_dense.reshape(C0, H0, W0, z_dim), (1, 2, 0, 3)).reshape(F, z_dim).T
    bd = jnp.transpose(b_dense.reshape(C0, H0, W0), (1, 2, 0)).reshape(1, F)

    layers = []
    H, W, Cin = H0, W0, C0
    for w_pt, b in conv_params:
        cin_w, Cout, K, _ = w_pt.shape
        assert cin_w == Cin and K == 4, "packing assumes k=4, s=2, p=1"
        # Equivalent forward-conv kernel: flip spatially, swap in/out -> HWIO.
        w_hwio = jnp.transpose(w_pt[:, :, ::-1, ::-1], (2, 3, 0, 1))  # (K,K,Cin,Cout)
        # Polyphase packing: rows = 3x3-window taps (r,c) x Cin,
        # cols = output phase (ph,pw) x Cout; unused taps stay zero.
        wp = jnp.zeros((9 * Cin, 4 * Cout), jnp.float32)
        for ph in range(2):
            for pw in range(2):
                for dh in range(2):
                    for dw in range(2):
                        r, c = ph + dh, pw + dw
                        wp = wp.at[
                            (r * 3 + c) * Cin:(r * 3 + c + 1) * Cin,
                            (ph * 2 + pw) * Cout:(ph * 2 + pw + 1) * Cout,
                        ].set(w_hwio[2 * dh + ph, 2 * dw + pw])
        bp = jnp.tile(b, 4).reshape(1, 4 * Cout)
        layers.append((wp, bp, (H, W, Cin, Cout)))
        H, W, Cin = 2 * H, 2 * W, Cout

    return dict(wd=wd, bd=bd, layers=layers, input_shape=input_shape)


# ----------------------------------------------------------------------------
# Forward pass: one fused pallas_call
# ----------------------------------------------------------------------------
def conv_decoder_forward(x, params):
    """x: (B, z_dim) -> (B, C_last, 4*H0, 4*W0) in NCHW (PyTorch order)."""
    C0, H0, W0 = params["input_shape"]
    layers = params["layers"]
    layer_dims = tuple(d for (_, _, d) in layers)
    B, z_dim = x.shape
    F = C0 * H0 * W0
    Hl, Wl, _, Cl = layer_dims[-1]
    Ho, Wo = 2 * Hl, 2 * Wl

    kernel = _make_decoder_kernel((C0, H0, W0), layer_dims)

    in_specs = [
        pl.BlockSpec((1, 1, z_dim), lambda b: (b, 0, 0)),   # one latent row / step
        pl.BlockSpec((z_dim, F), lambda b: (0, 0)),
        pl.BlockSpec((1, F), lambda b: (0, 0)),
    ]
    args = [x.reshape(B, 1, z_dim), params["wd"], params["bd"]]
    for wp, bp, (H, W, Cin, Cout) in layers:
        in_specs.append(pl.BlockSpec((9 * Cin, 4 * Cout), lambda b: (0, 0)))
        in_specs.append(pl.BlockSpec((1, 4 * Cout), lambda b: (0, 0)))
        args.extend([wp, bp])

    out_nhwc = pl.pallas_call(
        kernel,
        out_shape=jax.ShapeDtypeStruct((B, Ho, Wo, Cl), x.dtype),
        grid=(B,),
        in_specs=in_specs,
        out_specs=pl.BlockSpec((1, Ho, Wo, Cl), lambda b: (b, 0, 0, 0)),
        compiler_params=pltpu.CompilerParams(
            dimension_semantics=("parallel",)),   # v7x: shard batch over 2 TCs
    )(*args)

    # Single tiny layout permute back to PyTorch NCHW at the boundary.
    return jnp.transpose(out_nhwc, (0, 3, 1, 2))


# ----------------------------------------------------------------------------
# Pure-JAX reference (lax conv with lhs_dilation == transposed conv)
# ----------------------------------------------------------------------------
def reference_forward(x, w_dense, b_dense, conv_params, input_shape):
    C0, H0, W0 = input_shape
    B = x.shape[0]
    h = jnp.maximum(x @ w_dense.T + b_dense, 0.0)
    out = h.reshape(B, C0, H0, W0)
    out = jnp.transpose(out, (0, 2, 3, 1))  # NHWC
    n = len(conv_params)
    for i, (w_pt, b) in enumerate(conv_params):
        K = w_pt.shape[2]
        w_hwio = jnp.transpose(w_pt[:, :, ::-1, ::-1], (2, 3, 0, 1))
        out = lax.conv_general_dilated(
            out, w_hwio, window_strides=(1, 1),
            padding=((K - 2, K - 2), (K - 2, K - 2)),
            lhs_dilation=(2, 2),
            dimension_numbers=("NHWC", "HWIO", "NHWC"))
        out = out + b[None, None, None, :]
        if i < n - 1:
            out = jnp.maximum(out, 0.0)
    return jnp.transpose(out, (0, 3, 1, 2))


# ----------------------------------------------------------------------------
if __name__ == "__main__":
    key = jax.random.PRNGKey(0)
    keys = jax.random.split(key, 8)

    B = 2
    z_dim = 16
    input_shape = (4, 4, 4)      # (C0, H0, W0)
    channels = (8, 4)            # two ConvTranspose2d(k=4, s=2, p=1) layers

    C0, H0, W0 = input_shape
    F = C0 * H0 * W0

    # Linear(z_dim -> F): PyTorch layout (out, in); std=None init path.
    w_dense = jax.random.normal(keys[0], (F, z_dim), jnp.float32) * (2.0 / z_dim) ** 0.5
    b_dense = jnp.zeros((F,), jnp.float32)

    # ConvTranspose2d params, PyTorch weight layout (Cin, Cout, kH, kW).
    conv_params = []
    cur_c = C0
    for i, ch in enumerate(channels):
        w = jax.random.normal(keys[2 + 2 * i], (cur_c, ch, 4, 4), jnp.float32) * 0.1
        b = jax.random.normal(keys[3 + 2 * i], (ch,), jnp.float32) * 0.1
        conv_params.append((w, b))
        cur_c = ch

    x = jax.random.normal(keys[1], (B, z_dim), jnp.float32)

    # One-time packing (hoisted out of the forward path).
    params = prepare_params(w_dense, b_dense, conv_params, input_shape)

    out = conv_decoder_forward(x, params)
    out = jax.block_until_ready(out)
    assert out.shape == (B, channels[-1], 4 * H0, 4 * W0), out.shape

    ref = reference_forward(x, w_dense, b_dense, conv_params, input_shape)
    err = float(jnp.max(jnp.abs(out - ref)))
    assert jnp.allclose(out, ref, atol=1e-4, rtol=1e-4), err

    print("KERNEL_OK")
</pallas_src>

<mosaic_0001>
module attributes {stable_mosaic.version = 11 : i64} {
  func.func @kernel(%arg0: i32, %arg1: memref<1x1x16xf32, #tpu.memory_space<vmem>>, %arg2: memref<16x64xf32, #tpu.memory_space<vmem>>, %arg3: memref<1x64xf32, #tpu.memory_space<vmem>>, %arg4: memref<36x32xf32, #tpu.memory_space<vmem>>, %arg5: memref<1x32xf32, #tpu.memory_space<vmem>>, %arg6: memref<72x16xf32, #tpu.memory_space<vmem>>, %arg7: memref<1x16xf32, #tpu.memory_space<vmem>>, %arg8: memref<1x16x16x4xf32, #tpu.memory_space<vmem>>) attributes {dimension_semantics = [#tpu.dimension_semantics<parallel>], iteration_bounds = array<i64: 2>, scalar_prefetch = 0 : i64, scratch_operands = 0 : i64, tpu.core_type = #tpu.core_type<tc>, window_params = [{transform_indices = @transform_0, window_bounds = array<i64: 1, 1, 16>}, {pipeline_mode = #tpu.pipeline_mode<synchronous>, transform_indices = @transform_1, window_bounds = array<i64: 16, 64>}, {pipeline_mode = #tpu.pipeline_mode<synchronous>, transform_indices = @transform_2, window_bounds = array<i64: 1, 64>}, {pipeline_mode = #tpu.pipeline_mode<synchronous>, transform_indices = @transform_3, window_bounds = array<i64: 36, 32>}, {pipeline_mode = #tpu.pipeline_mode<synchronous>, transform_indices = @transform_4, window_bounds = array<i64: 1, 32>}, {pipeline_mode = #tpu.pipeline_mode<synchronous>, transform_indices = @transform_5, window_bounds = array<i64: 72, 16>}, {pipeline_mode = #tpu.pipeline_mode<synchronous>, transform_indices = @transform_6, window_bounds = array<i64: 1, 16>}, {transform_indices = @transform_7, window_bounds = array<i64: 1, 16, 16, 4>}]} {
    %c0 = arith.constant 0 : index
    %c0_0 = arith.constant 0 : index
    %c0_1 = arith.constant 0 : index
    %0 = vector.load %arg1[%c0, %c0_0, %c0_1] : memref<1x1x16xf32, #tpu.memory_space<vmem>>, vector<1x1x16xf32>
    %1 = vector.shape_cast %0 : vector<1x1x16xf32> to vector<1x16xf32>
    %c0_2 = arith.constant 0 : index
    %c0_3 = arith.constant 0 : index
    %2 = vector.load %arg2[%c0_2, %c0_3] : memref<16x64xf32, #tpu.memory_space<vmem>>, vector<16x64xf32>
    %cst = arith.constant dense<0.000000e+00> : vector<1x64xf32>
    %3 = tpu.matmul %1, %2, %cst {dimension_numbers = #tpu.dot_dimension_numbers<[1], [0], [0], [1], [0, 0, 1, 1], [], []>} : vector<1x16xf32>, vector<16x64xf32>, vector<1x64xf32> -> vector<1x64xf32>
    %c0_4 = arith.constant 0 : index
    %c0_5 = arith.constant 0 : index
    %4 = vector.load %arg3[%c0_4, %c0_5] : memref<1x64xf32, #tpu.memory_space<vmem>>, vector<1x64xf32>
    %5 = arith.addf %3, %4 : vector<1x64xf32>
    %cst_6 = arith.constant 0.000000e+00 : f32
    %6 = vector.broadcast %cst_6 : f32 to vector<1x64xf32>
    %7 = arith.maximumf %5, %6 : vector<1x64xf32>
    %8 = vector.extract_strided_slice %7 {offsets = [0, 0], sizes = [1, 4], strides = [1, 1]} : vector<1x64xf32> to vector<1x4xf32>
    %9 = vector.extract_strided_slice %7 {offsets = [0, 4], sizes = [1, 4], strides = [1, 1]} : vector<1x64xf32> to vector<1x4xf32>
    %10 = vector.extract_strided_slice %7 {offsets = [0, 8], sizes = [1, 4], strides = [1, 1]} : vector<1x64xf32> to vector<1x4xf32>
    %11 = vector.extract_strided_slice %7 {offsets = [0, 12], sizes = [1, 4], strides = [1, 1]} : vector<1x64xf32> to vector<1x4xf32>
    %12 = vector.extract_strided_slice %7 {offsets = [0, 16], sizes = [1, 4], strides = [1, 1]} : vector<1x64xf32> to vector<1x4xf32>
    %13 = vector.extract_strided_slice %7 {offsets = [0, 20], sizes = [1, 4], strides = [1, 1]} : vector<1x64xf32> to vector<1x4xf32>
    %14 = vector.extract_strided_slice %7 {offsets = [0, 24], sizes = [1, 4], strides = [1, 1]} : vector<1x64xf32> to vector<1x4xf32>
    %15 = vector.extract_strided_slice %7 {offsets = [0, 28], sizes = [1, 4], strides = [1, 1]} : vector<1x64xf32> to vector<1x4xf32>
    %16 = vector.extract_strided_slice %7 {offsets = [0, 32], sizes = [1, 4], strides = [1, 1]} : vector<1x64xf32> to vector<1x4xf32>
    %17 = vector.extract_strided_slice %7 {offsets = [0, 36], sizes = [1, 4], strides = [1, 1]} : vector<1x64xf32> to vector<1x4xf32>
    %18 = vector.extract_strided_slice %7 {offsets = [0, 40], sizes = [1, 4], strides = [1, 1]} : vector<1x64xf32> to vector<1x4xf32>
    %19 = vector.extract_strided_slice %7 {offsets = [0, 44], sizes = [1, 4], strides = [1, 1]} : vector<1x64xf32> to vector<1x4xf32>
    %20 = vector.extract_strided_slice %7 {offsets = [0, 48], sizes = [1, 4], strides = [1, 1]} : vector<1x64xf32> to vector<1x4xf32>
    %21 = vector.extract_strided_slice %7 {offsets = [0, 52], sizes = [1, 4], strides = [1, 1]} : vector<1x64xf32> to vector<1x4xf32>
    %22 = vector.extract_strided_slice %7 {offsets = [0, 56], sizes = [1, 4], strides = [1, 1]} : vector<1x64xf32> to vector<1x4xf32>
    %23 = vector.extract_strided_slice %7 {offsets = [0, 60], sizes = [1, 4], strides = [1, 1]} : vector<1x64xf32> to vector<1x4xf32>
    %24 = tpu.concatenate %8, %9, %10, %11, %12, %13, %14, %15, %16, %17, %18, %19, %20, %21, %22, %23 in 0 : vector<1x4xf32>, vector<1x4xf32>, vector<1x4xf32>, vector<1x4xf32>, vector<1x4xf32>, vector<1x4xf32>, vector<1x4xf32>, vector<1x4xf32>, vector<1x4xf32>, vector<1x4xf32>, vector<1x4xf32>, vector<1x4xf32>, vector<1x4xf32>, vector<1x4xf32>, vector<1x4xf32>, vector<1x4xf32> -> vector<16x4xf32>
    %25 = vector.shape_cast %24 : vector<16x4xf32> to vector<4x4x4xf32>
    %cst_7 = arith.constant 0.000000e+00 : f32
    %26 = vector.broadcast %cst_7 : f32 to vector<1x4x4xf32>
    %cst_8 = arith.constant 0.000000e+00 : f32
    %27 = vector.broadcast %cst_8 : f32 to vector<6x1x4xf32>
    %28 = tpu.concatenate %26, %25, %26 in 0 : vector<1x4x4xf32>, vector<4x4x4xf32>, vector<1x4x4xf32> -> vector<6x4x4xf32>
    %29 = tpu.concatenate %27, %28, %27 in 1 : vector<6x1x4xf32>, vector<6x4x4xf32>, vector<6x1x4xf32> -> vector<6x6x4xf32>
    %30 = vector.extract_strided_slice %29 {offsets = [0, 0, 0], sizes = [4, 4, 4], strides = [1, 1, 1]} : vector<6x6x4xf32> to vector<4x4x4xf32>
    %31 = vector.extract_strided_slice %29 {offsets = [0, 1, 0], sizes = [4, 4, 4], strides = [1, 1, 1]} : vector<6x6x4xf32> to vector<4x4x4xf32>
    %32 = vector.extract_strided_slice %29 {offsets = [0, 2, 0], sizes = [4, 4, 4], strides = [1, 1, 1]} : vector<6x6x4xf32> to vector<4x4x4xf32>
    %33 = vector.extract_strided_slice %29 {offsets = [1, 0, 0], sizes = [4, 4, 4], strides = [1, 1, 1]} : vector<6x6x4xf32> to vector<4x4x4xf32>
    %34 = vector.extract_strided_slice %29 {offsets = [1, 1, 0], sizes = [4, 4, 4], strides = [1, 1, 1]} : vector<6x6x4xf32> to vector<4x4x4xf32>
    %35 = vector.extract_strided_slice %29 {offsets = [1, 2, 0], sizes = [4, 4, 4], strides = [1, 1, 1]} : vector<6x6x4xf32> to vector<4x4x4xf32>
    %36 = vector.extract_strided_slice %29 {offsets = [2, 0, 0], sizes = [4, 4, 4], strides = [1, 1, 1]} : vector<6x6x4xf32> to vector<4x4x4xf32>
    %37 = vector.extract_strided_slice %29 {offsets = [2, 1, 0], sizes = [4, 4, 4], strides = [1, 1, 1]} : vector<6x6x4xf32> to vector<4x4x4xf32>
    %38 = vector.extract_strided_slice %29 {offsets = [2, 2, 0], sizes = [4, 4, 4], strides = [1, 1, 1]} : vector<6x6x4xf32> to vector<4x4x4xf32>
    %39 = tpu.concatenate %30, %31, %32, %33, %34, %35, %36, %37, %38 in 2 : vector<4x4x4xf32>, vector<4x4x4xf32>, vector<4x4x4xf32>, vector<4x4x4xf32>, vector<4x4x4xf32>, vector<4x4x4xf32>, vector<4x4x4xf32>, vector<4x4x4xf32>, vector<4x4x4xf32> -> vector<4x4x36xf32>
    %40 = vector.shape_cast %39 : vector<4x4x36xf32> to vector<16x36xf32>
    %c0_9 = arith.constant 0 : index
    %c0_10 = arith.constant 0 : index
    %41 = vector.load %arg4[%c0_9, %c0_10] : memref<36x32xf32, #tpu.memory_space<vmem>>, vector<36x32xf32>
    %cst_11 = arith.constant dense<0.000000e+00> : vector<16x32xf32>
    %42 = tpu.matmul %40, %41, %cst_11 {dimension_numbers = #tpu.dot_dimension_numbers<[1], [0], [0], [1], [0, 0, 1, 1], [], []>} : vector<16x36xf32>, vector<36x32xf32>, vector<16x32xf32> -> vector<16x32xf32>
    %c0_12 = arith.constant 0 : index
    %c0_13 = arith.constant 0 : index
    %43 = vector.load %arg5[%c0_12, %c0_13] : memref<1x32xf32, #tpu.memory_space<vmem>>, vector<1x32xf32>
    %44 = vector.broadcast %43 : vector<1x32xf32> to vector<16x32xf32>
    %45 = arith.addf %42, %44 : vector<16x32xf32>
    %cst_14 = arith.constant 0.000000e+00 : f32
    %46 = vector.broadcast %cst_14 : f32 to vector<16x32xf32>
    %47 = arith.maximumf %45, %46 : vector<16x32xf32>
    %48 = vector.extract_strided_slice %47 {offsets = [0, 0], sizes = [16, 8], strides = [1, 1]} : vector<16x32xf32> to vector<16x8xf32>
    %49 = vector.shape_cast %48 : vector<16x8xf32> to vector<4x4x8xf32>
    %50 = vector.extract_strided_slice %47 {offsets = [0, 8], sizes = [16, 8], strides = [1, 1]} : vector<16x32xf32> to vector<16x8xf32>
    %51 = vector.shape_cast %50 : vector<16x8xf32> to vector<4x4x8xf32>
    %52 = vector.extract_strided_slice %47 {offsets = [0, 16], sizes = [16, 8], strides = [1, 1]} : vector<16x32xf32> to vector<16x8xf32>
    %53 = vector.shape_cast %52 : vector<16x8xf32> to vector<4x4x8xf32>
    %54 = vector.extract_strided_slice %47 {offsets = [0, 24], sizes = [16, 8], strides = [1, 1]} : vector<16x32xf32> to vector<16x8xf32>
    %55 = vector.shape_cast %54 : vector<16x8xf32> to vector<4x4x8xf32>
    %56 = vector.shape_cast %49 : vector<4x4x8xf32> to vector<4x4x1x8xf32>
    %57 = vector.shape_cast %51 : vector<4x4x8xf32> to vector<4x4x1x8xf32>
    %58 = tpu.concatenate %56, %57 in 2 : vector<4x4x1x8xf32>, vector<4x4x1x8xf32> -> vector<4x4x2x8xf32>
    %59 = vector.shape_cast %58 : vector<4x4x2x8xf32> to vector<4x8x8xf32>
    %60 = vector.shape_cast %59 : vector<4x8x8xf32> to vector<4x1x8x8xf32>
    %61 = vector.shape_cast %53 : vector<4x4x8xf32> to vector<4x4x1x8xf32>
    %62 = vector.shape_cast %55 : vector<4x4x8xf32> to vector<4x4x1x8xf32>
    %63 = tpu.concatenate %61, %62 in 2 : vector<4x4x1x8xf32>, vector<4x4x1x8xf32> -> vector<4x4x2x8xf32>
    %64 = vector.shape_cast %63 : vector<4x4x2x8xf32> to vector<4x8x8xf32>
    %65 = vector.shape_cast %64 : vector<4x8x8xf32> to vector<4x1x8x8xf32>
    %66 = tpu.concatenate %60, %65 in 1 : vector<4x1x8x8xf32>, vector<4x1x8x8xf32> -> vector<4x2x8x8xf32>
    %67 = vector.shape_cast %66 : vector<4x2x8x8xf32> to vector<8x8x8xf32>
    %cst_15 = arith.constant 0.000000e+00 : f32
    %68 = vector.broadcast %cst_15 : f32 to vector<1x8x8xf32>
    %cst_16 = arith.constant 0.000000e+00 : f32
    %69 = vector.broadcast %cst_16 : f32 to vector<10x1x8xf32>
    %70 = tpu.concatenate %68, %67, %68 in 0 : vector<1x8x8xf32>, vector<8x8x8xf32>, vector<1x8x8xf32> -> vector<10x8x8xf32>
    %71 = tpu.concatenate %69, %70, %69 in 1 : vector<10x1x8xf32>, vector<10x8x8xf32>, vector<10x1x8xf32> -> vector<10x10x8xf32>
    %72 = vector.extract_strided_slice %71 {offsets = [0, 0, 0], sizes = [8, 8, 8], strides = [1, 1, 1]} : vector<10x10x8xf32> to vector<8x8x8xf32>
    %73 = vector.extract_strided_slice %71 {offsets = [0, 1, 0], sizes = [8, 8, 8], strides = [1, 1, 1]} : vector<10x10x8xf32> to vector<8x8x8xf32>
    %74 = vector.extract_strided_slice %71 {offsets = [0, 2, 0], sizes = [8, 8, 8], strides = [1, 1, 1]} : vector<10x10x8xf32> to vector<8x8x8xf32>
    %75 = vector.extract_strided_slice %71 {offsets = [1, 0, 0], sizes = [8, 8, 8], strides = [1, 1, 1]} : vector<10x10x8xf32> to vector<8x8x8xf32>
    %76 = vector.extract_strided_slice %71 {offsets = [1, 1, 0], sizes = [8, 8, 8], strides = [1, 1, 1]} : vector<10x10x8xf32> to vector<8x8x8xf32>
    %77 = vector.extract_strided_slice %71 {offsets = [1, 2, 0], sizes = [8, 8, 8], strides = [1, 1, 1]} : vector<10x10x8xf32> to vector<8x8x8xf32>
    %78 = vector.extract_strided_slice %71 {offsets = [2, 0, 0], sizes = [8, 8, 8], strides = [1, 1, 1]} : vector<10x10x8xf32> to vector<8x8x8xf32>
    %79 = vector.extract_strided_slice %71 {offsets = [2, 1, 0], sizes = [8, 8, 8], strides = [1, 1, 1]} : vector<10x10x8xf32> to vector<8x8x8xf32>
    %80 = vector.extract_strided_slice %71 {offsets = [2, 2, 0], sizes = [8, 8, 8], strides = [1, 1, 1]} : vector<10x10x8xf32> to vector<8x8x8xf32>
    %81 = tpu.concatenate %72, %73, %74, %75, %76, %77, %78, %79, %80 in 2 : vector<8x8x8xf32>, vector<8x8x8xf32>, vector<8x8x8xf32>, vector<8x8x8xf32>, vector<8x8x8xf32>, vector<8x8x8xf32>, vector<8x8x8xf32>, vector<8x8x8xf32>, vector<8x8x8xf32> -> vector<8x8x72xf32>
    %82 = vector.shape_cast %81 : vector<8x8x72xf32> to vector<64x72xf32>
    %c0_17 = arith.constant 0 : index
    %c0_18 = arith.constant 0 : index
    %83 = vector.load %arg6[%c0_17, %c0_18] : memref<72x16xf32, #tpu.memory_space<vmem>>, vector<72x16xf32>
    %cst_19 = arith.constant dense<0.000000e+00> : vector<64x16xf32>
    %84 = tpu.matmul %82, %83, %cst_19 {dimension_numbers = #tpu.dot_dimension_numbers<[1], [0], [0], [1], [0, 0, 1, 1], [], []>} : vector<64x72xf32>, vector<72x16xf32>, vector<64x16xf32> -> vector<64x16xf32>
    %c0_20 = arith.constant 0 : index
    %c0_21 = arith.constant 0 : index
    %85 = vector.load %arg7[%c0_20, %c0_21] : memref<1x16xf32, #tpu.memory_space<vmem>>, vector<1x16xf32>
    %86 = vector.broadcast %85 : vector<1x16xf32> to vector<64x16xf32>
    %87 = arith.addf %84, %86 : vector<64x16xf32>
    %88 = vector.extract_strided_slice %87 {offsets = [0, 0], sizes = [64, 4], strides = [1, 1]} : vector<64x16xf32> to vector<64x4xf32>
    %89 = vector.shape_cast %88 : vector<64x4xf32> to vector<8x8x4xf32>
    %90 = vector.extract_strided_slice %87 {offsets = [0, 4], sizes = [64, 4], strides = [1, 1]} : vector<64x16xf32> to vector<64x4xf32>
    %91 = vector.shape_cast %90 : vector<64x4xf32> to vector<8x8x4xf32>
    %92 = vector.extract_strided_slice %87 {offsets = [0, 8], sizes = [64, 4], strides = [1, 1]} : vector<64x16xf32> to vector<64x4xf32>
    %93 = vector.shape_cast %92 : vector<64x4xf32> to vector<8x8x4xf32>
    %94 = vector.extract_strided_slice %87 {offsets = [0, 12], sizes = [64, 4], strides = [1, 1]} : vector<64x16xf32> to vector<64x4xf32>
    %95 = vector.shape_cast %94 : vector<64x4xf32> to vector<8x8x4xf32>
    %96 = vector.shape_cast %89 : vector<8x8x4xf32> to vector<8x8x1x4xf32>
    %97 = vector.shape_cast %91 : vector<8x8x4xf32> to vector<8x8x1x4xf32>
    %98 = tpu.concatenate %96, %97 in 2 : vector<8x8x1x4xf32>, vector<8x8x1x4xf32> -> vector<8x8x2x4xf32>
    %99 = vector.shape_cast %98 : vector<8x8x2x4xf32> to vector<8x16x4xf32>
    %100 = vector.shape_cast %99 : vector<8x16x4xf32> to vector<8x1x16x4xf32>
    %101 = vector.shape_cast %93 : vector<8x8x4xf32> to vector<8x8x1x4xf32>
    %102 = vector.shape_cast %95 : vector<8x8x4xf32> to vector<8x8x1x4xf32>
    %103 = tpu.concatenate %101, %102 in 2 : vector<8x8x1x4xf32>, vector<8x8x1x4xf32> -> vector<8x8x2x4xf32>
    %104 = vector.shape_cast %103 : vector<8x8x2x4xf32> to vector<8x16x4xf32>
    %105 = vector.shape_cast %104 : vector<8x16x4xf32> to vector<8x1x16x4xf32>
    %106 = tpu.concatenate %100, %105 in 1 : vector<8x1x16x4xf32>, vector<8x1x16x4xf32> -> vector<8x2x16x4xf32>
    %107 = vector.shape_cast %106 : vector<8x2x16x4xf32> to vector<16x16x4xf32>
    %c0_22 = arith.constant 0 : index
    %c0_23 = arith.constant 0 : index
    %c0_24 = arith.constant 0 : index
    %c0_25 = arith.constant 0 : index
    %108 = vector.load %arg8[%c0_22, %c0_23, %c0_24, %c0_25] : memref<1x16x16x4xf32, #tpu.memory_space<vmem>>, vector<1x16x16x4xf32>
    %109 = vector.shape_cast %108 : vector<1x16x16x4xf32> to vector<16x16x4xf32>
    %110 = vector.shape_cast %107 : vector<16x16x4xf32> to vector<1x16x16x4xf32>
    tpu.vector_store %arg8[%c0_22, %c0_23, %c0_24, %c0_25], %110 {strides = array<i32>} : memref<1x16x16x4xf32, #tpu.memory_space<vmem>>, vector<1x16x16x4xf32>,
    return
  }
  func.func @transform_0(%arg0: i32) -> (i32, i32, i32) {
    %c0_i32 = arith.constant 0 : i32
    %c0_i32_0 = arith.constant 0 : i32
    %c0_i32_1 = arith.constant 0 : i32
    return %arg0, %c0_i32, %c0_i32_0 : i32, i32, i32
  }
  func.func @transform_1(%arg0: i32) -> (i32, i32) {
    %c0_i32 = arith.constant 0 : i32
    %c0_i32_0 = arith.constant 0 : i32
    %c0_i32_1 = arith.constant 0 : i32
    return %c0_i32, %c0_i32_0 : i32, i32
  }
  func.func @transform_2(%arg0: i32) -> (i32, i32) {
    %c0_i32 = arith.constant 0 : i32
    %c0_i32_0 = arith.constant 0 : i32
    %c0_i32_1 = arith.constant 0 : i32
    return %c0_i32, %c0_i32_0 : i32, i32
  }
  func.func @transform_3(%arg0: i32) -> (i32, i32) {
    %c0_i32 = arith.constant 0 : i32
    %c0_i32_0 = arith.constant 0 : i32
    %c0_i32_1 = arith.constant 0 : i32
    return %c0_i32, %c0_i32_0 : i32, i32
  }
  func.func @transform_4(%arg0: i32) -> (i32, i32) {
    %c0_i32 = arith.constant 0 : i32
    %c0_i32_0 = arith.constant 0 : i32
    %c0_i32_1 = arith.constant 0 : i32
    return %c0_i32, %c0_i32_0 : i32, i32
  }
  func.func @transform_5(%arg0: i32) -> (i32, i32) {
    %c0_i32 = arith.constant 0 : i32
    %c0_i32_0 = arith.constant 0 : i32
    %c0_i32_1 = arith.constant 0 : i32
    return %c0_i32, %c0_i32_0 : i32, i32
  }
  func.func @transform_6(%arg0: i32) -> (i32, i32) {
    %c0_i32 = arith.constant 0 : i32
    %c0_i32_0 = arith.constant 0 : i32
    %c0_i32_1 = arith.constant 0 : i32
    return %c0_i32, %c0_i32_0 : i32, i32
  }
  func.func @transform_7(%arg0: i32) -> (i32, i32, i32, i32) {
    %c0_i32 = arith.constant 0 : i32
    %c0_i32_0 = arith.constant 0 : i32
    %c0_i32_1 = arith.constant 0 : i32
    %c0_i32_2 = arith.constant 0 : i32
    return %arg0, %c0_i32, %c0_i32_0, %c0_i32_1 : i32, i32, i32, i32
  }
}

</mosaic_0001>

<bundles_post_ra>
// kernel: tpu_custom_call.1
= control target key start
LH: loop header
LB: loop body
LE: loop exit
PB: predicated region body
PF: predicated region fallthrough
CT: control target
= control target key end

     0   :  { %s3719_s24 = smov 0   ;;  %s5176_s0 = inlined_call_operand.vmem [shape: f32[2,1,16], index: 0, kind: input, shape index: {}]   ;;  %s5177_s1 = inlined_call_operand.vmem [shape: f32[16,64], index: 1, kind: input, shape index: {}]   ;;  %s5178_s2 = inlined_call_operand.vmem [shape: f32[1,64], index: 2, kind: input, shape index: {}]   ;;  %s5179_s3 = inlined_call_operand.vmem [shape: f32[36,32], index: 3, kind: input, shape index: {}]   ;;  %s5180_s4 = inlined_call_operand.vmem [shape: f32[1,32], index: 4, kind: input, shape index: {}]   ;;  %s5181_s5 = inlined_call_operand.vmem [shape: f32[72,16], index: 5, kind: input, shape index: {}]   ;;  %s5182_s6 = inlined_call_operand.vmem [shape: f32[1,16], index: 6, kind: input, shape index: {}]   ;;  %s5183_s7 = inlined_call_operand.vmem [shape: f32[2,16,16,4], index: 7, kind: output, shape index: {}]  }
   0x1 LB: > { %s3471_s25 = sadd.s32 4294967295, %s3645_s24   ;;  %p3475_p0 = scmp.ge.s32.totalorder %s3645_s24, 1  ;;  %s3645_s24 = sphi %s3719_s24, %s17_s24  }
   0x2   : > { %p235_p1 = scmp.lt.s32.totalorder %s3645_s24, 3 }
   0x4   : > { %p236_p2 = pnand %p3475_p0, %p235_p1 }
   0x6   : > { %239 = sbr.rel (%p236_p2) target bundleno = 1792 (0x700), region = 48 }
   0xd   : > { %v274_v0 = vld [vmem:[%s5177_s1] sm:$0xff]  ;;  %v275_v1 = vld [vmem:[%s5177_s1 + $0x8] sm:$0xff]  ;;  %v3647_v2 = vmov 0.0|0.0   ;;  %vm3648_vm0 = vmmov 0   ;;  %v3649_v4 = vmov 0.0   ;;  %p265_p3 = scmp.lt.s32.totalorder %s3471_s25, 1 }
   0xe   : > { %3572 = vmatprep.subr.bf16.mxu1 %v3647_v2  ;;  %v3573_v3 = vpack.c.bf16 %v275_v1, %v274_v0  ;;  %3526 = vmatprep.mubr.msk.f32.mxu1 %vm3648_vm0, %v3649_v4  ;;  %vm277_vm1 = vcmask 130048   ;;  %v276_v6 = vld [vmem:[%s5178_s2] sm:$0x1]  ;;  %s3650_s12 = smov 96   ;;  %s3651_s13 = smov 124   ;;  %v3746_v16 = vrot.slane %v3649_v4, 7 }
   0xf   : > { %s5241_s25 = smov (!%p265_p3, %s3471_s25), 1  ;;  %s3652_s14 = smov 116   ;;  %vm405_vm2 = vcmask 1040384   ;;  %vm413_vm3 = vcmask 1044480   ;;  %vm407_vm4 = vcmask 1041408   ;;  %vm409_vm5 = vcmask 1042432  }
  0x10   : > { %3574 = vmatpush3.bf16.msra.mxu1 %v3573_v3  ;;  %s267_s9 = scalar_lea.vmem %s5176_s0, %s5241_s25  ;;  %s3653_s15 = smov 120   ;;  %v3750_v18 = vsel %vm405_vm2, 0.0, %v3746_v16  ;;  %vm411_vm6 = vcmask 1043456   ;;  %vm415_vm7 = vcmask 1045504   ;;  %vm417_vm8 = vcmask 1046528  }
  0x11   : > { %v273_v5 = vld [vmem:[%s267_s9] sm:$0x1]  ;;  %s3654_s16 = smov 112   ;;  %s3655_s17 = smov 92   ;;  %v3754_v20 = vsel %vm413_vm3, %v3750_v18, 0.0  ;;  %vm562_vm9 = vcmask 31744  }
  0x12   : > { %s3656_s18 = smov 108   ;;  %s3657_s19 = smov 88   ;;  %v455_v21 = vrot.slane %v3754_v20, 1  ;;  %v471_v22 = vrot.slane %v3754_v20, 2  ;;  %vm567_vm10 = vcmask 64512   ;;  %vm572_vm11 = vcmask 97280  }
  0x13   : > { %3527 = vmatmul.mubr.msk.f32.vlgmr.msra.gmra.mrb[0].mxu1 %vm277_vm1, %v273_v5  ;;  %s3658_s20 = smov 104   ;;  %s3659_s21 = smov 84   ;;  %vm581_vm12 = vcmask 162816   ;;  %vm586_vm13 = vcmask 195584   ;;  %vm591_vm14 = vcmask 228352   ;;  %vm596_vm15 = vcmask 261120  }
  0x14   : > { %s3660_s22 = smov 100   ;;  %s3661_s23 = smov 80   ;;  %vm619_vm0 = vcmask 293888  }
  0x15   : > { %s3662_s26 = smov 72   ;;  %s3663_s27 = smov 76  }
  0x16   : > { %s3664_s28 = smov 4   ;;  %s3665_s29 = smov 68  }
  0x17   : > { %s3666_s30 = smov 8   ;;  %s3667_s8 = smov 24  }
  0x18   : > { %s3668_s9 = smov 28   ;;  %s3669_s10 = smov 12  }
  0x19   : > { %s3670_s11 = smov 16  }
  0xe6   : > { %v347_v7 = vpop.f32.mrb[0].mxu1 }
  0xe7   : > { %v348_v8 = vadd.f32 %v347_v7, %v276_v6  ;;  %v3528_v9 = vpop.f32.mrb[1].mxu1 }
  0xe8   : > { %v602_v9 = vld [vmem:[%s5179_s3 + $0x8] sm:$0xff] }
  0xe9   : > { %v351_v10 = vmax.f32 %v348_v8, 0.0  ;;  %v601_v8 = vld [vmem:[%s5179_s3] sm:$0xff] }
  0xeb   : > { %381 = vrot.lane.b32.xlu1 %v351_v10, %s3650_s12  ;;  %v353_v11 = vrot.slane %v351_v10, 7  ;;  %v361_v12 = vrot.slane %v351_v10, 5  ;;  %v357_v13 = vrot.slane %v351_v10, 6  ;;  %v365_v14 = vrot.slane %v351_v10, 4  ;;  %s3671_s12 = smov 20  }
  0xec   : > { %v369_v15 = vrot.slane %v351_v10, 3  ;;  %v373_v17 = vrot.slane %v351_v10, 2  ;;  %v377_v19 = vrot.slane %v351_v10, 1 }
  0xed   : > { %354 = vrot.lane.b32.xlu0 %v353_v11, %s3651_s13 }
  0xef   : > { %362 = vrot.lane.b32.xlu1 %v361_v12, %s3652_s14  ;;  %s3678_s14 = smov 40  }
  0xf1   : > { %358 = vrot.lane.b32.xlu0 %v357_v13, %s3653_s15 }
  0xf3   : > { %366 = vrot.lane.b32.xlu1 %v365_v14, %s3654_s16 }
  0xf5   : > { %384 = vrot.lane.b32.xlu0 %v353_v11, %s3655_s17  ;;  %v603_v11 = vld [vmem:[%s5179_s3 + $0x10] sm:$0xff] }
  0xf7   : > { %370 = vrot.lane.b32.xlu1 %v369_v15, %s3656_s18 }
  0xf9   : > { %387 = vrot.lane.b32.xlu0 %v357_v13, %s3657_s19 }
  0xfb   : > { %374 = vrot.lane.b32.xlu1 %v373_v17, %s3658_s20  ;;  %s3672_s20 = smov 32  }
  0xfd   : > { %390 = vrot.lane.b32.xlu0 %v361_v12, %s3659_s21  ;;  %v604_v12 = vld [vmem:[%s5179_s3 + $0x18] sm:$0xff] }
  0xfe   : > { %v3579_v13 = vpack.c.bf16 %v604_v12, %v603_v11 }
  0xff   : > { %378 = vrot.lane.b32.xlu1 %v377_v19, %s3660_s22 }
 0x101   : > { %393 = vrot.lane.b32.xlu0 %v365_v14, %s3661_s23 }
 0x103   : > { %399 = vrot.lane.b32.xlu1 %v373_v17, %s3662_s26 }
 0x105   : > { %396 = vrot.lane.b32.xlu0 %v369_v15, %s3663_s27  ;;  %v605_v15 = vld [vmem:[%s5179_s3 + $0x20] sm:$0xf] }
 0x107   : > { %459 = vrot.lane.b32.xlu1 %v455_v21, %s3664_s28 }
 0x109   : > { %402 = vrot.lane.b32.xlu0 %v377_v19, %s3665_s29 }
 0x10b   : > { %475 = vrot.lane.b32.xlu1 %v471_v22, %s3666_s30 }
 0x10d   : > { %532 = vrot.lane.b32.xlu0 %v3754_v20, %s3667_s8 }
 0x111   : > { %544 = vrot.lane.b32.xlu0 %v455_v21, %s3668_s9 }
 0x15d   : > { %v382_v23 = vpop.permute.xlu1 %381 }
 0x15f   : > { %v355_v24 = vpop.permute.xlu0 %354 }
 0x160   : > { %v406_v29 = vsel %vm405_vm2, %v351_v10, %v355_v24  ;;  %v3575_v10 = vpack.c.bf16 %v602_v9, %v601_v8 }
 0x161   : > { %v363_v25 = vpop.permute.xlu1 %362 }
 0x162   : > { %3576 = vmatprep.subr.bf16.mxu1 %v3575_v10 }
 0x163   : > { %v359_v26 = vpop.permute.xlu0 %358  ;;  %3578 = vmatpush3.bf16.msra.mxu1 %v3575_v10 }
 0x164   : > { %v408_v30 = vsel %vm407_vm4, %v406_v29, %v359_v26  ;;  %3580 = vmatprep.subr.bf16.mxu1 %v3579_v13 }
 0x165   : > { %v367_v27 = vpop.permute.xlu1 %366  ;;  %v410_v33 = vsel %vm409_vm5, %v408_v30, %v363_v25 }
 0x166   : > { %v412_v35 = vsel %vm411_vm6, %v410_v33, %v367_v27 }
 0x167   : > { %v385_v28 = vpop.permute.xlu0 %384  ;;  %3582 = vmatpush3.bf16.msra.mxu1 %v3579_v13 }
 0x168   : > { %v419_v43 = vsel %vm405_vm2, %v382_v23, %v385_v28  ;;  %3537 = vmatprep.subr.msk.mxu1 %vm411_vm6, %v605_v15 }
 0x169   : > { %v371_v31 = vpop.permute.xlu1 %370 }
 0x16a   : > { %v414_v37 = vsel %vm413_vm3, %v412_v35, %v371_v31 }
 0x16b   : > { %v388_v32 = vpop.permute.xlu0 %387  ;;  %3538 = vmatpush3.msk.msra.mxu1 %vm411_vm6, %v605_v15 }
 0x16c   : > { %v420_v44 = vsel %vm407_vm4, %v419_v43, %v388_v32  ;;  %vm1470_vm4 = vcmask 392192  }
 0x16d   : > { %v375_v34 = vpop.permute.xlu1 %374 }
 0x16e   : > { %v416_v38 = vsel %vm415_vm7, %v414_v37, %v375_v34 }
 0x16f   : > { %v391_v36 = vpop.permute.xlu0 %390 }
 0x170   : > { %v421_v46 = vsel %vm409_vm5, %v420_v44, %v391_v36  ;;  %vm1479_vm5 = vcmask 457728  }
 0x171   : > { %v379_v39 = vpop.permute.xlu1 %378 }
 0x172   : > { %v418_v40 = vsel %vm417_vm8, %v416_v38, %v379_v39 }
 0x173   : > { %v432_v41 = vrot.slane %v418_v40, 7  ;;  %v394_v42 = vpop.permute.xlu0 %393  ;;  %v428_v60 = vcombine.high %v418_v40, %v418_v40 }
 0x174   : > { %v422_v48 = vsel %vm411_vm6, %v421_v46, %v394_v42  ;;  %vm1513_vm6 = vcmask 588800  }
 0x175   : > { %v442_v45 = vsel %vm405_vm2, 0.0, %v432_v41  ;;  %v400_v51 = vpop.permute.xlu1 %399  ;;  %v433_v62 = vrot.slane %v428_v60, 7 }
 0x176   : > { %v3777_v47 = vsel %vm413_vm3, %v442_v45, 0.0 }
 0x177   : > { %488 = vrot.lane.b32.xlu1 %v3777_v47, %s3669_s10  ;;  %v397_v49 = vpop.permute.xlu0 %396  ;;  %v456_v58 = vrot.slane %v3777_v47, 1  ;;  %v472_v61 = vrot.slane %v3777_v47, 2  ;;  %v443_v1 = vsel %vm405_vm2, 0.0, %v433_v62 }
 0x178   : > { %v423_v50 = vsel %vm413_vm3, %v422_v48, %v397_v49  ;;  %v3807_v3 = vsel %vm413_vm3, %v443_v1, 0.0 }
 0x179   : > { %v424_v52 = vsel %vm415_vm7, %v423_v50, %v400_v51  ;;  %v457_v6 = vrot.slane %v3807_v3, 1  ;;  %v473_v7 = vrot.slane %v3807_v3, 2  ;;  %v460_v19 = vpop.permute.xlu1 %459 }
 0x17a   : > { %v563_v45 = vsel %vm562_vm9, %v3754_v20, %v460_v19 }
 0x17b   : > { %v403_v53 = vpop.permute.xlu0 %402 }
 0x17c   : > { %v425_v54 = vsel %vm417_vm8, %v424_v52, %v403_v53 }
 0x17d   : > { %v434_v55 = vrot.slane %v425_v54, 7  ;;  %v429_v63 = vcombine.high %v425_v54, %v425_v54  ;;  %v476_v23 = vpop.permute.xlu1 %475 }
 0x17e   : > { %v568_v49 = vsel %vm567_vm10, %v563_v45, %v476_v23 }
 0x17f   : > { %v444_v56 = vsel %vm405_vm2, 0.0, %v434_v55  ;;  %v435_v2 = vrot.slane %v429_v63, 7  ;;  %v3851_v21 = vpop.permute.xlu0 %532 }
 0x180   : > { %v3787_v57 = vsel %vm413_vm3, %v444_v56, 0.0 }
 0x181   : > { %528 = vrot.lane.b32.xlu0 %v3787_v57, %s3667_s8  ;;  %492 = vrot.lane.b32.xlu1 %v3787_v57, %s3669_s10  ;;  %v458_v59 = vrot.slane %v3787_v57, 1  ;;  %v474_v0 = vrot.slane %v3787_v57, 2  ;;  %v445_v4 = vsel %vm405_vm2, 0.0, %v435_v2 }
 0x182   : > { %v450_v5 = vsel %vm413_vm3, %v445_v4, 0.0  ;;  %vm1461_vm3 = vcmask 326656  }
 0x183   : > { %v500_v14 = vrot.slane %v450_v5, 1  ;;  %v513_v17 = vrot.slane %v450_v5, 2  ;;  %v3853_v24 = vpop.permute.xlu0 %544 }
 0x185   : > { %461 = vrot.lane.b32.xlu0 %v456_v58, %s3664_s28  ;;  %501 = vrot.lane.b32.xlu1 %v456_v58, %s3670_s11 }
 0x189   : > { %505 = vrot.lane.b32.xlu1 %v458_v59, %s3670_s11  ;;  %465 = vrot.lane.b32.xlu0 %v458_v59, %s3664_s28 }
 0x18d   : > { %514 = vrot.lane.b32.xlu1 %v472_v61, %s3671_s12  ;;  %477 = vrot.lane.b32.xlu0 %v472_v61, %s3666_s30 }
 0x191   : > { %518 = vrot.lane.b32.xlu1 %v474_v0, %s3671_s12  ;;  %481 = vrot.lane.b32.xlu0 %v474_v0, %s3666_s30 }
 0x195   : > { %526 = vrot.lane.b32.xlu1 %v3807_v3, %s3667_s8  ;;  %490 = vrot.lane.b32.xlu0 %v3807_v3, %s3669_s10 }
 0x199   : > { %530 = vrot.lane.b32.xlu1 %v450_v5, %s3667_s8  ;;  %494 = vrot.lane.b32.xlu0 %v450_v5, %s3669_s10  ;;  %s3675_s10 = smov 48  }
 0x19d   : > { %463 = vrot.lane.b32.xlu1 %v457_v6, %s3664_s28  ;;  %540 = vrot.lane.b32.xlu0 %v458_v59, %s3668_s9 }
 0x1a1   : > { %479 = vrot.lane.b32.xlu1 %v473_v7, %s3666_s30  ;;  %552 = vrot.lane.b32.xlu0 %v474_v0, %s3672_s20 }
 0x1a5   : > { %538 = vrot.lane.b32.xlu1 %v457_v6, %s3668_s9  ;;  %503 = vrot.lane.b32.xlu0 %v457_v6, %s3670_s11 }
 0x1a9   : > { %542 = vrot.lane.b32.xlu1 %v500_v14, %s3668_s9  ;;  %507 = vrot.lane.b32.xlu0 %v500_v14, %s3670_s11 }
 0x1ad   : > { %550 = vrot.lane.b32.xlu1 %v473_v7, %s3672_s20  ;;  %516 = vrot.lane.b32.xlu0 %v473_v7, %s3671_s12 }
 0x1b1   : > { %554 = vrot.lane.b32.xlu1 %v513_v17, %s3672_s20  ;;  %520 = vrot.lane.b32.xlu0 %v513_v17, %s3671_s12  ;;  %s3677_s12 = smov 56  }
 0x1b5   : > { %556 = vrot.lane.b32.xlu0 %v471_v22, %s3672_s20 }
 0x1e9   : > { %v489_v25 = vpop.permute.xlu1 %488 }
 0x1ea   : > { %v573_v20 = vsel %vm572_vm11, %v568_v49, %v489_v25 }
 0x1f3   : > { %v493_v26 = vpop.permute.xlu1 %492  ;;  %v529_v27 = vpop.permute.xlu0 %528 }
 0x1f7   : > { %v502_v28 = vpop.permute.xlu1 %501  ;;  %v462_v29 = vpop.permute.xlu0 %461 }
 0x1f8   : > { %v564_v52 = vsel %vm562_vm9, %v3777_v47, %v462_v29  ;;  %v577_v56 = vsel %vm277_vm1, %v573_v20, %v502_v28  ;;  %v1181_v28 = vrot.slane %v3750_v18, 1 }
 0x1fb   : > { %v506_v30 = vpop.permute.xlu1 %505  ;;  %v466_v31 = vpop.permute.xlu0 %465 }
 0x1fc   : > { %v566_v47 = vsel %vm562_vm9, %v3787_v57, %v466_v31 }
 0x1ff   : > { %v515_v32 = vpop.permute.xlu1 %514  ;;  %v478_v33 = vpop.permute.xlu0 %477 }
 0x200   : > { %v569_v53 = vsel %vm567_vm10, %v564_v52, %v478_v33  ;;  %v582_v61 = vsel %vm581_vm12, %v577_v56, %v515_v32  ;;  %v3673_v32 = vmov 1966171168   ;;  %v710_v33 = vlaneseq }
 0x203   : > { %v519_v34 = vpop.permute.xlu1 %518  ;;  %v482_v35 = vpop.permute.xlu0 %481 }
 0x204   : > { %v571_v0 = vsel %vm567_vm10, %v566_v47, %v482_v35  ;;  %v3909_v35 = vshrl.u32 %v710_v33, 7 }
 0x207   : > { %v527_v36 = vpop.permute.xlu1 %526  ;;  %v491_v37 = vpop.permute.xlu0 %490 }
 0x208   : > { %v574_v55 = vsel %vm572_vm11, %v569_v53, %v491_v37  ;;  %v587_v1 = vsel %vm586_vm13, %v582_v61, %v527_v36  ;;  %v3479_v36 = vld [vmem:[%s5180_s4] ss:$0 sm:$0xff] }
 0x20b   : > { %v531_v22 = vpop.permute.xlu1 %530  ;;  %v495_v38 = vpop.permute.xlu0 %494 }
 0x20f   : > { %v464_v39 = vpop.permute.xlu1 %463  ;;  %v541_v40 = vpop.permute.xlu0 %540 }
 0x210   : > { %v565_v46 = vsel %vm562_vm9, %v3807_v3, %v464_v39  ;;  %v576_v3 = vsel %vm572_vm11, %v571_v0, %v495_v38 }
 0x213   : > { %v480_v41 = vpop.permute.xlu1 %479  ;;  %v553_v42 = vpop.permute.xlu0 %552 }
 0x214   : > { %v570_v48 = vsel %vm567_vm10, %v565_v46, %v480_v41 }
 0x215   : > { %v575_v54 = vsel %vm572_vm11, %v570_v48, %v493_v26 }
 0x216   : > { %v579_v62 = vsel %vm277_vm1, %v575_v54, %v506_v30 }
 0x217   : > { %v539_v43 = vpop.permute.xlu1 %538  ;;  %v504_v44 = vpop.permute.xlu0 %503  ;;  %v584_v57 = vsel %vm581_vm12, %v579_v62, %v519_v34 }
 0x218   : > { %v578_v58 = vsel %vm277_vm1, %v574_v55, %v504_v44  ;;  %v592_v4 = vsel %vm591_vm14, %v587_v1, %v539_v43  ;;  %v589_v14 = vsel %vm586_vm13, %v584_v57, %v531_v22  ;;  %v3919_v44 = vsub.s32 0, %v3909_v35 }
 0x21a   : > { %5204 = vst [vmem:[#allocation2_spill] sm:$0xff] %v3919_v44 }
 0x21b   : > { %v543_v50 = vpop.permute.xlu1 %542  ;;  %v508_v51 = vpop.permute.xlu0 %507 }
 0x21c   : > { %v580_v6 = vsel %vm277_vm1, %v576_v3, %v508_v51  ;;  %v594_v17 = vsel %vm591_vm14, %v589_v14, %v543_v50 }
 0x21f   : > { %v551_v59 = vpop.permute.xlu1 %550  ;;  %v517_v60 = vpop.permute.xlu0 %516 }
 0x220   : > { %v583_v63 = vsel %vm581_vm12, %v578_v58, %v517_v60  ;;  %v597_v7 = vsel %vm596_vm15, %v592_v4, %v551_v59 }
 0x221   : > { %v588_v2 = vsel %vm586_vm13, %v583_v63, %v529_v27 }
 0x222   : > { %v593_v5 = vsel %vm591_vm14, %v588_v2, %v541_v40 }
 0x223   : > { %v521_v8 = vpop.permute.xlu0 %520  ;;  %v598_v9 = vsel %vm596_vm15, %v593_v5, %v553_v42  ;;  %v555_v12 = vpop.permute.xlu1 %554 }
 0x224   : > { %v585_v10 = vsel %vm581_vm12, %v580_v6, %v521_v8  ;;  %v617_v11 = vcombine.low %v597_v7, %v598_v9  ;;  %v599_v23 = vsel %vm596_vm15, %v594_v17, %v555_v12 }
 0x225   : > { %v590_v13 = vsel %vm586_vm13, %v585_v10, %v3851_v21  ;;  %v1156_v21 = vsel %vm405_vm2, %v3746_v16, 0.0  ;;  %v708_v16 = vunpack.c.l.s4 %v3673_v32 }
 0x226   : > { %3539 = vmatprep.mubr.msk.f32.mxu1 %vm619_vm0, %v617_v11  ;;  %v595_v15 = vsel %vm591_vm14, %v590_v13, %v3853_v24  ;;  %v1182_v27 = vrot.slane %v1156_v21, 1  ;;  %v1230_v29 = vrot.slane %v1156_v21, 2  ;;  %v1229_v24 = vrot.slane %v3750_v18, 2 }
 0x227   : > { %v557_v19 = vpop.permute.xlu0 %556  ;;  %v709_v34 = vunpack.c.0.s8 %v708_v16 }
 0x228   : > { %v600_v25 = vsel %vm596_vm15, %v595_v15, %v557_v19  ;;  %v3899_v30 = vsel %vm417_vm8, %v1181_v28, %v1182_v27  ;;  %v3905_v31 = vsel %vm415_vm7, %v1229_v24, %v1230_v29 }
 0x229   : > { %v618_v26 = vcombine.low %v599_v23, %v600_v25  ;;  %1205 = vrot.lane.b32.xlu1 %v3899_v30, %s3666_s30  ;;  %v3915_v38 = vsub.s32 %v709_v34, %v3909_v35 }
 0x22b   : > { %3540 = vmatmul.mubr.msk.f32.vlgmr.msra.gmra.mrb[2].mxu1 %vm619_vm0, %v618_v26 }
 0x22d   : > { %1253 = vrot.lane.b32.xlu1 %v3905_v31, %s3670_s11 }
 0x29b   : > { %v3986_v21 = vpop.permute.xlu1 %1205 }
 0x29f   : > { %v3988_v27 = vpop.permute.xlu1 %1253 }
 0x2fe   : > { %v3541_v37 = vpop.f32.mrb[2].mxu1 }
 0x2ff   : > { %v699_v22 = vadd.f32 %v3541_v37, %v3479_v36  ;;  %v693_v39 = vpop.f32.mrb[3].mxu1 }
 0x300   : > { %v694_v40 = vadd.f32 %v3479_v36, %v693_v39 }
 0x301   : > { %v703_v41 = vmax.f32 %v699_v22, 0.0 }
 0x302   : > { %v702_v42 = vmax.f32 %v694_v40, 0.0  ;;  %v3674_v40 = vmov 1983009808  }
 0x303   : > { %v762_v43 = vrot.slane %v703_v41, %v3915_v38  ;;  %v755_v46 = vcombine.high %v703_v41, %v703_v41  ;;  %v999_v41 = vunpack.c.l.s4 %v3674_v40 }
 0x304   : > { %v713_v45 = vrot.slane %v702_v42, %v3915_v38  ;;  %v706_v60 = vcombine.high %v702_v42, %v702_v42 }
 0x305   : > { %v770_v48 = vcombine.high %v762_v43, %v762_v43  ;;  %v778_v49 = vrot.slane %v762_v43, %v3915_v38  ;;  %v769_v54 = vrot.slane %v755_v46, %v3915_v38 }
 0x306   : > { %v721_v50 = vcombine.high %v713_v45, %v713_v45  ;;  %v729_v52 = vrot.slane %v713_v45, %v3915_v38  ;;  %v720_v0 = vrot.slane %v706_v60, %v3915_v38 }
 0x307   : > { %v792_v51 = vrot.slane %v770_v48, %v3915_v38  ;;  %v855_v53 = vrot.slane %v778_v49, %v3919_v44  ;;  %v800_v58 = vcombine.high %v778_v49, %v778_v49  ;;  %v771_v59 = vcombine.high %v769_v54, %v769_v54 }
 0x308   : > { %v743_v20 = vrot.slane %v721_v50, %v3915_v38  ;;  %v823_v56 = vrot.slane %v729_v52, %v3919_v44  ;;  %v785_v62 = vrot.slane %v769_v54, %v3915_v38  ;;  %v751_v4 = vcombine.high %v729_v52, %v729_v52 }
 0x309   : > { %900 = vrot.lane.b32.xlu1 %v855_v53, %s3653_s15  ;;  %v859_v55 = vrot.slane %v792_v51, %v3919_v44  ;;  %v802_v61 = vcombine.high %v792_v51, %v792_v51  ;;  %v863_v63 = vrot.slane %v800_v58, %v3919_v44  ;;  %v799_v2 = vrot.slane %v771_v59, %v3915_v38 }
 0x30a   : > { %v827_v47 = vrot.slane %v743_v20, %v3919_v44  ;;  %v871_v3 = vrot.slane %v785_v62, %v3919_v44  ;;  %v722_v5 = vcombine.high %v720_v0, %v720_v0  ;;  %v753_v6 = vcombine.high %v743_v20, %v743_v20 }
 0x30b   : > { %902 = vrot.lane.b32.xlu0 %v859_v55, %s3653_s15  ;;  %v867_v1 = vrot.slane %v802_v61, %v3919_v44  ;;  %v875_v57 = vrot.slane %v799_v2, %v3919_v44  ;;  %v3946_v7 = vrot.slane %v720_v0, %v3915_v38  ;;  %v831_v8 = vrot.slane %v751_v4, %v3919_v44 }
 0x30c   : > { %v835_v9 = vrot.slane %v753_v6, %v3919_v44  ;;  %v3953_v10 = vrot.slane %v722_v5, %v3915_v38  ;;  %v3958_v12 = vcombine.high %v785_v62, %v785_v62  ;;  %v3963_v14 = vcombine.high %v799_v2, %v799_v2 }
 0x30d   : > { %884 = vrot.lane.b32.xlu1 %v823_v56, %s3653_s15  ;;  %v839_v11 = vrot.slane %v3946_v7, %v3919_v44  ;;  %v3970_v17 = vcombine.high %v3946_v7, %v3946_v7  ;;  %v1000_v48 = vunpack.c.0.s8 %v999_v41 }
 0x30e   : > { %v843_v13 = vrot.slane %v3953_v10, %v3919_v44  ;;  %v879_v15 = vrot.slane %v3958_v12, %v3919_v44  ;;  %v883_v19 = vrot.slane %v3963_v14, %v3919_v44  ;;  %v3977_v23 = vcombine.high %v3953_v10, %v3953_v10 }
 0x30f   : > { %886 = vrot.lane.b32.xlu0 %v827_v47, %s3653_s15  ;;  %v847_v25 = vrot.slane %v3970_v17, %v3919_v44  ;;  %v4009_v54 = vsub.s32 %v1000_v48, %v3909_v35 }
 0x310   : > { %v851_v26 = vrot.slane %v3977_v23, %v3919_v44 }
 0x311   : > { %904 = vrot.lane.b32.xlu1 %v863_v63, %s3653_s15  ;;  %5205 = vst [vmem:[#allocation3_spill] sm:$0xff] %v4009_v54 }
 0x313   : > { %906 = vrot.lane.b32.xlu0 %v867_v1, %s3653_s15 }
 0x315   : > { %908 = vrot.lane.b32.xlu1 %v871_v3, %s3653_s15 }
 0x317   : > { %910 = vrot.lane.b32.xlu0 %v875_v57, %s3653_s15 }
 0x319   : > { %888 = vrot.lane.b32.xlu1 %v831_v8, %s3653_s15 }
 0x31b   : > { %890 = vrot.lane.b32.xlu0 %v835_v9, %s3653_s15 }
 0x31d   : > { %892 = vrot.lane.b32.xlu1 %v839_v11, %s3653_s15 }
 0x31f   : > { %894 = vrot.lane.b32.xlu0 %v843_v13, %s3653_s15 }
 0x321   : > { %912 = vrot.lane.b32.xlu1 %v879_v15, %s3653_s15 }
 0x323   : > { %914 = vrot.lane.b32.xlu0 %v883_v19, %s3653_s15 }
 0x325   : > { %896 = vrot.lane.b32.xlu1 %v847_v25, %s3653_s15 }
 0x327   : > { %898 = vrot.lane.b32.xlu0 %v851_v26, %s3653_s15 }
 0x37b   : > { %v901_v28 = vpop.permute.xlu1 %900 }
 0x37c   : > { %v940_v29 = vsel %vm405_vm2, %v778_v49, %v901_v28 }
 0x37d   : > { %v903_v24 = vpop.permute.xlu0 %902  ;;  %980 = vrot.lane.b32.xlu1 %v940_v29, %s3654_s16 }
 0x37e   : > { %v941_v32 = vsel %vm405_vm2, %v792_v51, %v903_v24 }
 0x37f   : > { %v885_v16 = vpop.permute.xlu1 %884  ;;  %982 = vrot.lane.b32.xlu0 %v941_v32, %s3654_s16 }
 0x380   : > { %v932_v33 = vsel %vm405_vm2, %v729_v52, %v885_v16 }
 0x381   : > { %v887_v34 = vpop.permute.xlu0 %886  ;;  %964 = vrot.lane.b32.xlu1 %v932_v33, %s3654_s16 }
 0x382   : > { %v933_v36 = vsel %vm405_vm2, %v743_v20, %v887_v34  ;;  %v1064_v20 = vcombine.low %v940_v29, %v941_v32 }
 0x383   : > { %v905_v37 = vpop.permute.xlu1 %904  ;;  %966 = vrot.lane.b32.xlu0 %v933_v36, %s3654_s16 }
 0x384   : > { %v942_v22 = vsel %vm405_vm2, %v800_v58, %v905_v37 }
 0x385   : > { %v907_v39 = vpop.permute.xlu0 %906  ;;  %984 = vrot.lane.b32.xlu1 %v942_v22, %s3654_s16 }
 0x386   : > { %v943_v42 = vsel %vm405_vm2, %v802_v61, %v907_v39  ;;  %v1072_v61 = vrot.slane %v1064_v20, %v4009_v54 }
 0x387   : > { %v909_v43 = vpop.permute.xlu1 %908  ;;  %986 = vrot.lane.b32.xlu0 %v943_v42, %s3654_s16  ;;  %v1065_v51 = vcombine.low %v942_v22, %v943_v42 }
 0x388   : > { %v944_v45 = vsel %vm405_vm2, %v785_v62, %v909_v43  ;;  %v996_v62 = vcombine.low %v932_v33, %v933_v36 }
 0x389   : > { %v911_v46 = vpop.permute.xlu0 %910  ;;  %988 = vrot.lane.b32.xlu1 %v944_v45, %s3654_s16  ;;  %v1079_v58 = vrot.slane %v1065_v51, %v4009_v54 }
 0x38a   : > { %v945_v49 = vsel %vm405_vm2, %v799_v2, %v911_v46  ;;  %v1004_v5 = vrot.slane %v996_v62, %v4009_v54 }
 0x38b   : > { %v889_v50 = vpop.permute.xlu1 %888  ;;  %990 = vrot.lane.b32.xlu0 %v945_v49, %s3654_s16  ;;  %v1080_v0 = vcombine.low %v1072_v61, %v1079_v58  ;;  %v1098_v3 = vcombine.low %v944_v45, %v945_v49 }
 0x38c   : > { %v934_v52 = vsel %vm405_vm2, %v751_v4, %v889_v50 }
 0x38d   : > { %v891_v53 = vpop.permute.xlu0 %890  ;;  %968 = vrot.lane.b32.xlu1 %v934_v52, %s3654_s16  ;;  %v1136_v8 = vrot.slane %v1080_v0, 7  ;;  %v1106_v11 = vrot.slane %v1098_v3, %v4009_v54 }
 0x38e   : > { %v935_v55 = vsel %vm405_vm2, %v753_v6, %v891_v53 }
 0x38f   : > { %v893_v56 = vpop.permute.xlu1 %892  ;;  %970 = vrot.lane.b32.xlu0 %v935_v55, %s3654_s16  ;;  %v997_v59 = vcombine.low %v934_v52, %v935_v55  ;;  %v4038_v26 = vsel %vm405_vm2, 0.0, %v1136_v8  ;;  %v1161_v34 = vsel %vm405_vm2, %v1136_v8, 0.0 }
 0x390   : > { %v936_v60 = vsel %vm405_vm2, %v3946_v7, %v893_v56  ;;  %v1196_v37 = vrot.slane %v4038_v26, 1  ;;  %v1197_v22 = vrot.slane %v1161_v34, 1  ;;  %v1244_v40 = vrot.slane %v4038_v26, 2 }
 0x391   : > { %972 = vrot.lane.b32.xlu1 %v936_v60, %s3654_s16  ;;  %v895_v47 = vpop.permute.xlu0 %894  ;;  %v1011_v1 = vrot.slane %v997_v59, %v4009_v54  ;;  %v1245_v41 = vrot.slane %v1161_v34, 2 }
 0x392   : > { %v937_v35 = vsel %vm405_vm2, %v3953_v10, %v895_v47  ;;  %v1198_v39 = vsel %vm417_vm8, %v1196_v37, %v1197_v22 }
 0x393   : > { %v913_v63 = vpop.permute.xlu1 %912  ;;  %974 = vrot.lane.b32.xlu0 %v937_v35, %s3654_s16  ;;  %v1012_v10 = vcombine.low %v1004_v5, %v1011_v1  ;;  %v1246_v43 = vsel %vm415_vm7, %v1244_v40, %v1245_v41 }
 0x394   : > { %v946_v2 = vsel %vm405_vm2, %v3958_v12, %v913_v63  ;;  %v1030_v12 = vcombine.low %v936_v60, %v937_v35 }
 0x395   : > { %992 = vrot.lane.b32.xlu1 %v946_v2, %s3654_s16  ;;  %v915_v4 = vpop.permute.xlu0 %914 }
 0x396   : > { %v947_v57 = vsel %vm405_vm2, %v3963_v14, %v915_v4  ;;  %v1038_v28 = vrot.slane %v1030_v12, %v4009_v54 }
 0x397   : > { %v897_v6 = vpop.permute.xlu1 %896  ;;  %v1099_v7 = vcombine.low %v946_v2, %v947_v57  ;;  %994 = vrot.lane.b32.xlu0 %v947_v57, %s3654_s16 }
 0x398   : > { %v938_v9 = vsel %vm405_vm2, %v3970_v17, %v897_v6  ;;  %v1132_v17 = vrot.slane %v1012_v10, 7 }
 0x399   : > { %v1113_v13 = vrot.slane %v1099_v7, %v4009_v54  ;;  %976 = vrot.lane.b32.xlu1 %v938_v9, %s3654_s16  ;;  %v899_v15 = vpop.permute.xlu0 %898 }
 0x39a   : > { %v939_v14 = vsel %vm405_vm2, %v3977_v23, %v899_v15  ;;  %v4047_v23 = vsel %vm405_vm2, 0.0, %v1132_v17  ;;  %v1157_v42 = vsel %vm405_vm2, %v1132_v17, 0.0 }
 0x39b   : > { %v1114_v19 = vcombine.low %v1106_v11, %v1113_v13  ;;  %978 = vrot.lane.b32.xlu0 %v939_v14, %s3654_s16  ;;  %v1031_v25 = vcombine.low %v938_v9, %v939_v14  ;;  %v1184_v45 = vrot.slane %v4047_v23, 1  ;;  %v1185_v46 = vrot.slane %v1157_v42, 1  ;;  %s3676_s16 = smov 64  }
 0x39c   : > { %v1232_v49 = vrot.slane %v4047_v23, 2  ;;  %v1233_v50 = vrot.slane %v1157_v42, 2 }
 0x39d   : > { %v1045_v29 = vrot.slane %v1031_v25, %v4009_v54  ;;  %1363 = vrot.lane.b32.xlu1 %v4038_v26, %s3675_s10  ;;  %v1138_v24 = vrot.slane %v1114_v19, 7  ;;  %v1186_v48 = vsel %vm417_vm8, %v1184_v45, %v1185_v46 }
 0x39e   : > { %v1234_v51 = vsel %vm415_vm7, %v1232_v49, %v1233_v50 }
 0x39f   : > { %v1046_v32 = vcombine.low %v1038_v28, %v1045_v29  ;;  %1286 = vrot.lane.b32.xlu0 %v4038_v26, %s3667_s8  ;;  %v4052_v33 = vsel %vm405_vm2, 0.0, %v1138_v24  ;;  %v1163_v52 = vsel %vm405_vm2, %v1138_v24, 0.0 }
 0x3a0   : > { %v1202_v53 = vrot.slane %v4052_v33, 1  ;;  %v1203_v20 = vrot.slane %v1163_v52, 1  ;;  %v1250_v56 = vrot.slane %v4052_v33, 2  ;;  %v1251_v58 = vrot.slane %v1163_v52, 2 }
 0x3a1   : > { %1278 = vrot.lane.b32.xlu1 %v4047_v23, %s3667_s8  ;;  %v1134_v16 = vrot.slane %v1046_v32, 7 }
 0x3a2   : > { %v1204_v55 = vsel %vm417_vm8, %v1202_v53, %v1203_v20  ;;  %v1252_v60 = vsel %vm415_vm7, %v1250_v56, %v1251_v58 }
 0x3a3   : > { %1290 = vrot.lane.b32.xlu0 %v4052_v33, %s3667_s8  ;;  %v4060_v36 = vsel %vm405_vm2, 0.0, %v1134_v16  ;;  %v1159_v59 = vsel %vm405_vm2, %v1134_v16, 0.0 }
 0x3a4   : > { %v1190_v47 = vrot.slane %v4060_v36, 1  ;;  %v1191_v61 = vrot.slane %v1159_v59, 1  ;;  %v1238_v35 = vrot.slane %v4060_v36, 2  ;;  %v1239_v63 = vrot.slane %v1159_v59, 2 }
 0x3a5   : > { %1367 = vrot.lane.b32.xlu1 %v4052_v33, %s3675_s10 }
 0x3a6   : > { %v1192_v62 = vsel %vm417_vm8, %v1190_v47, %v1191_v61  ;;  %v1240_v0 = vsel %vm415_vm7, %v1238_v35, %v1239_v63  ;;  %v1497_v63 = vld [vmem:[%s5181_s5] sm:$0xff] }
 0x3a7   : > { %1282 = vrot.lane.b32.xlu0 %v4060_v36, %s3667_s8 }
 0x3a9   : > { %1359 = vrot.lane.b32.xlu1 %v4060_v36, %s3675_s10 }
 0x3ab   : > { %1314 = vrot.lane.b32.xlu0 %v1198_v39, %s3672_s20 }
 0x3ad   : > { %1215 = vrot.lane.b32.xlu1 %v1198_v39, %s3666_s30 }
 0x3af   : > { %1411 = vrot.lane.b32.xlu0 %v1246_v43, %s3676_s16 }
 0x3b1   : > { %1263 = vrot.lane.b32.xlu1 %v1246_v43, %s3670_s11 }
 0x3b3   : > { %1207 = vrot.lane.b32.xlu0 %v1186_v48, %s3666_s30 }
 0x3b5   : > { %1387 = vrot.lane.b32.xlu1 %v1198_v39, %s3677_s12 }
 0x3b7   : > { %1255 = vrot.lane.b32.xlu0 %v1234_v51, %s3670_s11 }
 0x3b9   : > { %1341 = vrot.lane.b32.xlu1 %v1246_v43, %s3678_s14 }
 0x3bb   : > { %1333 = vrot.lane.b32.xlu0 %v1234_v51, %s3678_s14 }
 0x3bd   : > { %1306 = vrot.lane.b32.xlu1 %v1186_v48, %s3672_s20 }
 0x3bf   : > { %1318 = vrot.lane.b32.xlu0 %v1204_v55, %s3672_s20 }
 0x3c1   : > { %1219 = vrot.lane.b32.xlu1 %v1204_v55, %s3666_s30 }
 0x3c3   : > { %1345 = vrot.lane.b32.xlu0 %v1252_v60, %s3678_s14 }
 0x3c5   : > { %1267 = vrot.lane.b32.xlu1 %v1252_v60, %s3670_s11 }
 0x3c7   : > { %1310 = vrot.lane.b32.xlu0 %v1192_v62, %s3672_s20 }
 0x3c9   : > { %1391 = vrot.lane.b32.xlu1 %v1204_v55, %s3677_s12 }
 0x3cb   : > { %1407 = vrot.lane.b32.xlu0 %v1240_v0, %s3676_s16 }
 0x3cd   : > { %1415 = vrot.lane.b32.xlu1 %v1252_v60, %s3676_s16 }
 0x3d1   : > { %1211 = vrot.lane.b32.xlu1 %v1192_v62, %s3666_s30 }
 0x3d5   : > { %1259 = vrot.lane.b32.xlu1 %v1240_v0, %s3670_s11 }
 0x3d9   : > { %1383 = vrot.lane.b32.xlu1 %v1192_v62, %s3677_s12 }
 0x3dd   : > { %1337 = vrot.lane.b32.xlu1 %v1240_v0, %s3678_s14  ;;  %v1498_v0 = vld [vmem:[%s5181_s5 + $0x8] sm:$0xff] }
 0x3ef   : > { %v981_v1 = vpop.permute.xlu1 %980 }
 0x3f1   : > { %v983_v2 = vpop.permute.xlu0 %982 }
 0x3f2   : > { %v1081_v57 = vcombine.low %v981_v1, %v983_v2  ;;  %v3583_v2 = vpack.c.bf16 %v1498_v0, %v1497_v63 }
 0x3f3   : > { %v965_v3 = vpop.permute.xlu1 %964 }
 0x3f4   : > { %v1089_v9 = vrot.slane %v1081_v57, %v4009_v54  ;;  %3584 = vmatprep.subr.bf16.mxu0 %v3583_v2 }
 0x3f5   : > { %v967_v4 = vpop.permute.xlu0 %966  ;;  %3586 = vmatpush3.bf16.msra.mxu0 %v3583_v2 }
 0x3f6   : > { %v1013_v15 = vcombine.low %v965_v3, %v967_v4 }
 0x3f7   : > { %v985_v5 = vpop.permute.xlu1 %984 }
 0x3f8   : > { %v1021_v29 = vrot.slane %v1013_v15, %v4009_v54 }
 0x3f9   : > { %v987_v6 = vpop.permute.xlu0 %986 }
 0x3fa   : > { %v1082_v7 = vcombine.low %v985_v5, %v987_v6  ;;  %v1499_v6 = vld [vmem:[%s5181_s5 + $0x10] sm:$0xff] }
 0x3fb   : > { %v989_v8 = vpop.permute.xlu1 %988 }
 0x3fc   : > { %v1096_v10 = vrot.slane %v1082_v7, %v4009_v54  ;;  %v1500_v7 = vld [vmem:[%s5181_s5 + $0x18] sm:$0xff] }
 0x3fd   : > { %v991_v11 = vpop.permute.xlu0 %990 }
 0x3fe   : > { %v1097_v12 = vcombine.low %v1089_v9, %v1096_v10  ;;  %v1115_v37 = vcombine.low %v989_v8, %v991_v11  ;;  %v3587_v8 = vpack.c.bf16 %v1500_v7, %v1499_v6 }
 0x3ff   : > { %v969_v13 = vpop.permute.xlu1 %968 }
 0x400   : > { %v1137_v14 = vrot.slane %v1097_v12, 7  ;;  %v1123_v42 = vrot.slane %v1115_v37, %v4009_v54  ;;  %3588 = vmatprep.subr.bf16.mxu0 %v3587_v8  ;;  %v1501_v12 = vld [vmem:[%s5181_s5 + $0x20] sm:$0xff] }
 0x401   : > { %v971_v19 = vpop.permute.xlu0 %970  ;;  %3590 = vmatpush3.bf16.msra.mxu0 %v3587_v8 }
 0x402   : > { %v1014_v25 = vcombine.low %v969_v13, %v971_v19  ;;  %v4110_v17 = vsel %vm405_vm2, 0.0, %v1137_v14  ;;  %v1162_v56 = vsel %vm405_vm2, %v1137_v14, 0.0  ;;  %v1502_v13 = vld [vmem:[%s5181_s5 + $0x28] sm:$0xff] }
 0x403   : > { %v973_v28 = vpop.permute.xlu1 %972  ;;  %1365 = vrot.lane.b32.xlu0 %v4110_v17, %s3675_s10  ;;  %1288 = vrot.lane.b32.xlu1 %v4110_v17, %s3667_s8  ;;  %v1199_v60 = vrot.slane %v4110_v17, 1  ;;  %v1200_v47 = vrot.slane %v1162_v56, 1  ;;  %v1247_v62 = vrot.slane %v4110_v17, 2  ;;  %v1248_v35 = vrot.slane %v1162_v56, 2 }
 0x404   : > { %v1028_v24 = vrot.slane %v1014_v25, %v4009_v54  ;;  %v3591_v19 = vpack.c.bf16 %v1502_v13, %v1501_v12 }
 0x405   : > { %v975_v32 = vpop.permute.xlu0 %974  ;;  %v1201_v61 = vsel %vm417_vm8, %v1199_v60, %v1200_v47  ;;  %v1249_v4 = vsel %vm415_vm7, %v1247_v62, %v1248_v35 }
 0x406   : > { %v1029_v16 = vcombine.low %v1021_v29, %v1028_v24  ;;  %v1047_v43 = vcombine.low %v973_v28, %v975_v32  ;;  %3592 = vmatprep.subr.bf16.mxu0 %v3591_v19  ;;  %v1503_v24 = vld [vmem:[%s5181_s5 + $0x30] sm:$0xff]  ;;  %v1504_v32 = vld [vmem:[%s5181_s5 + $0x38] sm:$0xff] }
 0x407   : > { %v993_v34 = vpop.permute.xlu1 %992  ;;  %3594 = vmatpush3.bf16.msra.mxu0 %v3591_v19 }
 0x408   : > { %v1133_v22 = vrot.slane %v1029_v16, 7  ;;  %v1055_v51 = vrot.slane %v1047_v43, %v4009_v54 }
 0x409   : > { %v995_v39 = vpop.permute.xlu0 %994 }
 0x40a   : > { %v1116_v40 = vcombine.low %v993_v34, %v995_v39  ;;  %v4119_v41 = vsel %vm405_vm2, 0.0, %v1133_v22  ;;  %v1158_v1 = vsel %vm405_vm2, %v1133_v22, 0.0  ;;  %v3595_v34 = vpack.c.bf16 %v1504_v32, %v1503_v24 }
 0x40b   : > { %1280 = vrot.lane.b32.xlu0 %v4119_v41, %s3667_s8  ;;  %v977_v46 = vpop.permute.xlu1 %976  ;;  %v1187_v5 = vrot.slane %v4119_v41, 1  ;;  %v1188_v57 = vrot.slane %v1158_v1, 1  ;;  %v1235_v10 = vrot.slane %v4119_v41, 2  ;;  %v1236_v11 = vrot.slane %v1158_v1, 2 }
 0x40c   : > { %v1130_v45 = vrot.slane %v1116_v40, %v4009_v54  ;;  %3596 = vmatprep.subr.bf16.mxu0 %v3595_v34 }
 0x40d   : > { %v979_v48 = vpop.permute.xlu0 %978  ;;  %v1189_v9 = vsel %vm417_vm8, %v1187_v5, %v1188_v57  ;;  %v1237_v28 = vsel %vm415_vm7, %v1235_v10, %v1236_v11  ;;  %3598 = vmatpush3.bf16.msra.mxu0 %v3595_v34 }
 0x40e   : > { %v1131_v49 = vcombine.low %v1123_v42, %v1130_v45  ;;  %v1048_v50 = vcombine.low %v977_v46, %v979_v48  ;;  %v1505_v42 = vld [vmem:[%s5181_s5 + $0x40] sm:$0xff] }
 0x40f   : > { %1357 = vrot.lane.b32.xlu0 %v4119_v41, %s3675_s10  ;;  %v4154_v3 = vpop.permute.xlu1 %1363  ;;  %3558 = vmatprep.subr.mxu0 %v1505_v42 }
 0x410   : > { %v1062_v52 = vrot.slane %v1048_v50, %v4009_v54  ;;  %v1139_v53 = vrot.slane %v1131_v49, 7 }
 0x411   : > { %3559 = vmatpush3.msra.mxu0 %v1505_v42  ;;  %v4208_v50 = vpop.permute.xlu0 %1286 }
 0x412   : > { %v1063_v20 = vcombine.low %v1055_v51, %v1062_v52  ;;  %v4130_v55 = vsel %vm405_vm2, 0.0, %v1139_v53  ;;  %v1164_v14 = vsel %vm405_vm2, %v1139_v53, 0.0 }
 0x413   : > { %1292 = vrot.lane.b32.xlu1 %v4130_v55, %s3667_s8  ;;  %v4174_v15 = vpop.permute.xlu1 %1278  ;;  %v1303_v25 = vrot.slane %v4130_v55, 1  ;;  %v1304_v29 = vrot.slane %v1164_v14, 1  ;;  %v1330_v52 = vrot.slane %v4130_v55, 2  ;;  %v1331_v53 = vrot.slane %v1164_v14, 2 }
 0x414   : > { %v1135_v58 = vrot.slane %v1063_v20, 7 }
 0x415   : > { %v1305_v22 = vsel %vm417_vm8, %v1303_v25, %v1304_v29  ;;  %v1332_v20 = vsel %vm415_vm7, %v1330_v52, %v1331_v53  ;;  %v4217_v56 = vpop.permute.xlu0 %1290 }
 0x416   : > { %v4136_v59 = vsel %vm405_vm2, 0.0, %v1135_v58  ;;  %v1160_v16 = vsel %vm405_vm2, %v1135_v58, 0.0 }
 0x417   : > { %1361 = vrot.lane.b32.xlu0 %v4136_v59, %s3675_s10  ;;  %1284 = vrot.lane.b32.xlu1 %v4136_v59, %s3667_s8  ;;  %v4190_v37 = vpop.permute.xlu1 %1367  ;;  %v1193_v39 = vrot.slane %v4136_v59, 1  ;;  %v1194_v40 = vrot.slane %v1160_v16, 1  ;;  %v1241_v45 = vrot.slane %v4136_v59, 2  ;;  %v1242_v46 = vrot.slane %v1160_v16, 2 }
 0x419   : > { %v1195_v43 = vsel %vm417_vm8, %v1193_v39, %v1194_v40  ;;  %v1243_v49 = vsel %vm415_vm7, %v1241_v45, %v1242_v46  ;;  %v4225_v60 = vpop.permute.xlu0 %1282  ;;  %v1429_v46 = vsel %vm567_vm10, %v3750_v18, %v3986_v21  ;;  %vm1488_vm7 = vcmask 523264  }
 0x41a   : > { %v1437_v54 = vsel %vm277_vm1, %v1429_v46, %v3988_v27 }
 0x41b   : > { %1316 = vrot.lane.b32.xlu0 %v1201_v61, %s3672_s20  ;;  %1217 = vrot.lane.b32.xlu1 %v1201_v61, %s3666_s30  ;;  %v4201_v48 = vpop.permute.xlu1 %1359 }
 0x41f   : > { %1265 = vrot.lane.b32.xlu0 %v1249_v4, %s3670_s11  ;;  %1343 = vrot.lane.b32.xlu1 %v1249_v4, %s3678_s14  ;;  %v4210_v51 = vpop.permute.xlu1 %1215 }
 0x423   : > { %1389 = vrot.lane.b32.xlu0 %v1201_v61, %s3677_s12  ;;  %1308 = vrot.lane.b32.xlu1 %v1189_v9, %s3672_s20  ;;  %v4219_v58 = vpop.permute.xlu1 %1263 }
 0x427   : > { %1413 = vrot.lane.b32.xlu0 %v1249_v4, %s3676_s16  ;;  %1335 = vrot.lane.b32.xlu1 %v1237_v28, %s3678_s14  ;;  %v4227_v47 = vpop.permute.xlu1 %1387 }
 0x42b   : > { %1209 = vrot.lane.b32.xlu0 %v1189_v9, %s3666_s30  ;;  %1320 = vrot.lane.b32.xlu1 %v1305_v22, %s3672_s20  ;;  %v4232_v61 = vpop.permute.xlu1 %1341 }
 0x42f   : > { %1257 = vrot.lane.b32.xlu0 %v1237_v28, %s3670_s11  ;;  %1213 = vrot.lane.b32.xlu1 %v1195_v43, %s3666_s30  ;;  %v1307_v35 = vpop.permute.xlu1 %1306 }
 0x433   : > { %1381 = vrot.lane.b32.xlu0 %v1189_v9, %s3677_s12  ;;  %1339 = vrot.lane.b32.xlu1 %v1243_v49, %s3678_s14  ;;  %v4240_v0 = vpop.permute.xlu1 %1219 }
 0x437   : > { %1405 = vrot.lane.b32.xlu0 %v1237_v28, %s3676_s16  ;;  %1369 = vrot.lane.b32.xlu1 %v4130_v55, %s3675_s10  ;;  %v4230_v55 = vpop.permute.xlu0 %1314  ;;  %v4246_v2 = vpop.permute.xlu1 %1267 }
 0x43b   : > { %1347 = vrot.lane.b32.xlu0 %v1332_v20, %s3678_s14  ;;  %1393 = vrot.lane.b32.xlu1 %v1305_v22, %s3677_s12  ;;  %v4236_v62 = vpop.permute.xlu0 %1411  ;;  %v4248_v5 = vpop.permute.xlu1 %1391 }
 0x43f   : > { %1312 = vrot.lane.b32.xlu0 %v1195_v43, %s3672_s20  ;;  %1417 = vrot.lane.b32.xlu1 %v1332_v20, %s3676_s16  ;;  %v1208_v63 = vpop.permute.xlu0 %1207  ;;  %v4252_v6 = vpop.permute.xlu1 %1415  ;;  %s3494_s20 = sshll.u32 %s5241_s25, 8 }
 0x440   : > { %v1430_v45 = vsel %vm567_vm10, %v4047_v23, %v1208_v63  ;;  %v1445_v23 = vsel %vm586_vm13, %v1437_v54, %v4174_v15 }
 0x443   : > { %1261 = vrot.lane.b32.xlu0 %v1243_v49, %s3670_s11  ;;  %v1256_v1 = vpop.permute.xlu0 %1255  ;;  %v1212_v8 = vpop.permute.xlu1 %1211 }
 0x447   : > { %1385 = vrot.lane.b32.xlu0 %v1195_v43, %s3677_s12  ;;  %v1334_v4 = vpop.permute.xlu0 %1333  ;;  %v1260_v10 = vpop.permute.xlu1 %1259 }
 0x44b   : > { %1409 = vrot.lane.b32.xlu0 %v1243_v49, %s3676_s16  ;;  %v4250_v57 = vpop.permute.xlu0 %1318  ;;  %v1384_v11 = vpop.permute.xlu1 %1383  ;;  %v1438_v49 = vsel %vm277_vm1, %v1430_v45, %v1256_v1 }
 0x44f   : > { %1371 = vrot.lane.b32.xlu0 %v3750_v18, %s3675_s10  ;;  %v4254_v7 = vpop.permute.xlu0 %1345  ;;  %v1453_v18 = vsel %vm596_vm15, %v1445_v23, %v1307_v35 }
 0x453   : > { %1395 = vrot.lane.b32.xlu0 %v3899_v30, %s3677_s12  ;;  %v4256_v9 = vpop.permute.xlu0 %1310  ;;  %s4861_s12 = scalar_lea.vmem %s5183_s7, %s3494_s20 }
 0x457   : > { %1419 = vrot.lane.b32.xlu0 %v3905_v31, %s3676_s16  ;;  %v1408_v30 = vpop.permute.xlu0 %1407  ;;  %v4260_v31 = vpop.permute.xlu1 %1337 }
 0x475   : > { %v4258_v12 = vpop.permute.xlu0 %1365  ;;  %v4262_v14 = vpop.permute.xlu1 %1288 }
 0x47d   : > { %v1281_v13 = vpop.permute.xlu0 %1280 }
 0x47e   : > { %v1446_v52 = vsel %vm586_vm13, %v1438_v49, %v1281_v13  ;;  %v1462_v13 = vsel %vm1461_vm3, %v1453_v18, %v1334_v4 }
 0x481   : > { %v1358_v19 = vpop.permute.xlu0 %1357 }
 0x485   : > { %v4264_v25 = vpop.permute.xlu1 %1292 }
 0x489   : > { %v1285_v28 = vpop.permute.xlu1 %1284  ;;  %v4266_v29 = vpop.permute.xlu0 %1361 }
 0x48d   : > { %v1218_v24 = vpop.permute.xlu1 %1217  ;;  %v1317_v32 = vpop.permute.xlu0 %1316 }
 0x491   : > { %v4268_v16 = vpop.permute.xlu1 %1343  ;;  %v1266_v34 = vpop.permute.xlu0 %1265 }
 0x495   : > { %v4270_v22 = vpop.permute.xlu0 %1389  ;;  %v1309_v39 = vpop.permute.xlu1 %1308 }
 0x496   : > { %v1454_v53 = vsel %vm596_vm15, %v1446_v52, %v1309_v39  ;;  %v1471_v39 = vsel %vm1470_vm4, %v1462_v13, %v1358_v19 }
 0x499   : > { %v4272_v40 = vpop.permute.xlu0 %1413  ;;  %v1336_v42 = vpop.permute.xlu1 %1335 }
 0x49a   : > { %v1463_v44 = vsel %vm1461_vm3, %v1454_v53, %v1336_v42 }
 0x49b   : > { %v1472_v21 = vsel %vm1470_vm4, %v1463_v44, %v4201_v48 }
 0x49c   : > { %v1481_v27 = vsel %vm1479_vm5, %v1472_v21, %v1384_v11  ;;  %v1432_v11 = vsel %vm567_vm10, %v4060_v36, %v1212_v8  ;;  %v1434_v36 = vsel %vm567_vm10, %v4038_v26, %v4210_v51 }
 0x49d   : > { %v1210_v43 = vpop.permute.xlu0 %1209  ;;  %v4287_v63 = vpop.permute.xlu1 %1320  ;;  %v1490_v44 = vsel %vm1488_vm7, %v1481_v27, %v1408_v30  ;;  %v1440_v46 = vsel %vm277_vm1, %v1432_v11, %v1260_v10 }
 0x49e   : > { %v1431_v4 = vsel %vm567_vm10, %v4119_v41, %v1210_v43  ;;  %v1448_v52 = vsel %vm586_vm13, %v1440_v46, %v1285_v28 }
 0x4a1   : > { %v1258_v20 = vpop.permute.xlu0 %1257  ;;  %v1214_v42 = vpop.permute.xlu1 %1213 }
 0x4a2   : > { %v1439_v45 = vsel %vm277_vm1, %v1431_v4, %v1258_v20  ;;  %v1433_v23 = vsel %vm567_vm10, %v4136_v59, %v1214_v42  ;;  %v1435_v20 = vsel %vm567_vm10, %v4110_v17, %v1218_v24 }
 0x4a3   : > { %v1447_v30 = vsel %vm586_vm13, %v1439_v45, %v4225_v60  ;;  %v1442_v60 = vsel %vm277_vm1, %v1434_v36, %v4219_v58  ;;  %v1443_v26 = vsel %vm277_vm1, %v1435_v20, %v1266_v34 }
 0x4a4   : > { %v1455_v8 = vsel %vm596_vm15, %v1447_v30, %v4256_v9  ;;  %v1450_v18 = vsel %vm586_vm13, %v1442_v60, %v4262_v14 }
 0x4a5   : > { %v1382_v1 = vpop.permute.xlu0 %1381  ;;  %v1340_v19 = vpop.permute.xlu1 %1339  ;;  %v1458_v9 = vsel %vm596_vm15, %v1450_v18, %v1317_v32  ;;  %v1464_v17 = vsel %vm1461_vm3, %v1455_v8, %v4260_v31 }
 0x4a6   : > { %v1480_v54 = vsel %vm1479_vm5, %v1471_v39, %v1382_v1  ;;  %v1467_v14 = vsel %vm1461_vm3, %v1458_v9, %v4268_v16 }
 0x4a7   : > { %v1476_v31 = vsel %vm1470_vm4, %v1467_v14, %v4190_v37 }
 0x4a9   : > { %v1406_v15 = vpop.permute.xlu0 %1405  ;;  %v1370_v41 = vpop.permute.xlu1 %1369 }
 0x4aa   : > { %v1489_v35 = vsel %vm1488_vm7, %v1480_v54, %v1406_v15 }
 0x4ab   : > { %3560 = vmatprep.mubr.msk.f32.mxu0 %vm1513_vm6, %v1489_v35 }
 0x4ac   : > { %3561 = vmatmul.mubr.msk.f32.vlgmr.msra.gmra.mrb[0].mxu0 %vm1513_vm6, %v1490_v44 }
 0x4ad   : > { %v1348_v48 = vpop.permute.xlu0 %1347  ;;  %v1394_v32 = vpop.permute.xlu1 %1393 }
 0x4b1   : > { %v1313_v49 = vpop.permute.xlu0 %1312  ;;  %v1418_v13 = vpop.permute.xlu1 %1417 }
 0x4b2   : > { %v1456_v53 = vsel %vm596_vm15, %v1448_v52, %v1313_v49 }
 0x4b3   : > { %v1465_v10 = vsel %vm1461_vm3, %v1456_v53, %v1340_v19 }
 0x4b4   : > { %v1474_v21 = vsel %vm1470_vm4, %v1465_v10, %v4154_v3  ;;  %v1473_v3 = vsel %vm1470_vm4, %v1464_v17, %v4266_v29 }
 0x4b5   : > { %v1262_v43 = vpop.permute.xlu0 %1261 }
 0x4b6   : > { %v1441_v28 = vsel %vm277_vm1, %v1433_v23, %v1262_v43  ;;  %v5206_v43 = vld [vmem:[#allocation2_spill] sm:$0xff] }
 0x4b7   : > { %v1449_v59 = vsel %vm586_vm13, %v1441_v28, %v4208_v50 }
 0x4b8   : > { %v1457_v51 = vsel %vm596_vm15, %v1449_v59, %v4230_v55  ;;  %v1451_v55 = vsel %vm586_vm13, %v1443_v26, %v4217_v56 }
 0x4b9   : > { %v1466_v58 = vsel %vm1461_vm3, %v1457_v51, %v4232_v61  ;;  %v1386_v50 = vpop.permute.xlu0 %1385  ;;  %v1483_v61 = vsel %vm1479_vm5, %v1474_v21, %v4227_v47  ;;  %v1485_v47 = vsel %vm1479_vm5, %v1476_v31, %v4248_v5 }
 0x4ba   : > { %v1475_v24 = vsel %vm1470_vm4, %v1466_v58, %v4258_v12  ;;  %v1482_v34 = vsel %vm1479_vm5, %v1473_v3, %v1386_v50  ;;  %v1459_v12 = vsel %vm596_vm15, %v1451_v55, %v4250_v57  ;;  %v1492_v29 = vsel %vm1488_vm7, %v1483_v61, %v4236_v62 }
 0x4bb   : > { %v1484_v16 = vsel %vm1479_vm5, %v1475_v24, %v4270_v22  ;;  %v1468_v22 = vsel %vm1461_vm3, %v1459_v12, %v4254_v7  ;;  %v1436_v62 = vsel %vm567_vm10, %v4052_v33, %v4240_v0 }
 0x4bc   : > { %v1493_v37 = vsel %vm1488_vm7, %v1484_v16, %v4272_v40  ;;  %v1477_v39 = vsel %vm1470_vm4, %v1468_v22, %v1370_v41  ;;  %v1494_v40 = vsel %vm1488_vm7, %v1485_v47, %v4252_v6  ;;  %v1444_v5 = vsel %vm277_vm1, %v1436_v62, %v4246_v2 }
 0x4bd   : > { %v1410_v1 = vpop.permute.xlu0 %1409  ;;  %v1486_v27 = vsel %vm1479_vm5, %v1477_v39, %v1394_v32  ;;  %v1452_v42 = vsel %vm586_vm13, %v1444_v5, %v4264_v25  ;;  %v4390_v25 = vld [vmem:[%s5182_s6] ss:$0 sm:$0xff] }
 0x4be   : > { %v1491_v56 = vsel %vm1488_vm7, %v1482_v34, %v1410_v1  ;;  %v1495_v7 = vsel %vm1488_vm7, %v1486_v27, %v1418_v13  ;;  %v1460_v33 = vsel %vm596_vm15, %v1452_v42, %v4287_v63 }
 0x4bf   : > { %3563 = vmatprep.mubr.msk.f32.mxu0 %vm1513_vm6, %v1491_v56  ;;  %v1469_v0 = vsel %vm1461_vm3, %v1460_v33, %v1348_v48 }
 0x4c0   : > { %3564 = vmatmul.mubr.msk.f32.gmra.mrb[2].mxu0 %vm1513_vm6, %v1492_v29 }
 0x4c1   : > { %3566 = vmatprep.mubr.msk.f32.mxu0 %vm1513_vm6, %v1493_v37  ;;  %v1372_v57 = vpop.permute.xlu0 %1371 }
 0x4c2   : > { %v1478_v6 = vsel %vm1470_vm4, %v1469_v0, %v1372_v57 }
 0x4c4   : > { %3567 = vmatmul.mubr.msk.f32.gmra.mrb[4].mxu0 %vm1513_vm6, %v1494_v40 }
 0x4c5   : > { %3569 = vmatprep.mubr.msk.f32.mxu0 %vm1513_vm6, %v1495_v7  ;;  %v1396_v54 = vpop.permute.xlu0 %1395 }
 0x4c6   : > { %v1487_v15 = vsel %vm1479_vm5, %v1478_v6, %v1396_v54 }
 0x4c9   : > { %v1420_v2 = vpop.permute.xlu0 %1419 }
 0x4ca   : > { %v1496_v35 = vsel %vm1488_vm7, %v1487_v15, %v1420_v2 }
 0x4cb   : > { %3570 = vmatmul.mubr.msk.f32.gmra.mrb[6].mxu0 %vm1513_vm6, %v1496_v35 }
 0x57f   : > { %v3562_v44 = vpop.f32.mrb[0].mxu0 }
 0x580   : > { %v1610_v4 = vadd.f32 %v3562_v44, %v4390_v25  ;;  %v1604_v63 = vpop.f32.mrb[1].mxu0 }
 0x581   : > { %v1605_v48 = vadd.f32 %v4390_v25, %v1604_v63 }
 0x582   : > { %v1707_v19 = vrot.slane %v1610_v4, %v3915_v38  ;;  %v1700_v11 = vcombine.high %v1610_v4, %v1610_v4 }
 0x583   : > { %v1658_v45 = vrot.slane %v1605_v48, %v3915_v38  ;;  %v1651_v18 = vcombine.high %v1605_v48, %v1605_v48 }
 0x584   : > { %v1715_v46 = vcombine.high %v1707_v19, %v1707_v19  ;;  %v4397_v49 = vrot.slane %v1707_v19, %v3915_v38  ;;  %v1714_v53 = vrot.slane %v1700_v11, %v3915_v38 }
 0x585   : > { %v1666_v52 = vcombine.high %v1658_v45, %v1658_v45  ;;  %v4404_v23 = vrot.slane %v1658_v45, %v3915_v38  ;;  %v1665_v58 = vrot.slane %v1651_v18, %v3915_v38 }
 0x586   : > { %v4400_v30 = vrot.slane %v1715_v46, %v3915_v38  ;;  %v2142_v36 = vrot.slane %v4397_v49, %v5206_v43  ;;  %v1716_v10 = vcombine.high %v1714_v53, %v1714_v53  ;;  %v4417_v28 = vcombine.high %v4397_v49, %v4397_v49 }
 0x587   : > { %v4407_v41 = vrot.slane %v1666_v52, %v3915_v38  ;;  %v2110_v60 = vrot.slane %v4404_v23, %v5206_v43  ;;  %v4430_v26 = vrot.slane %v1714_v53, %v3915_v38  ;;  %v4444_v50 = vcombine.high %v4404_v23, %v4404_v23 }
 0x588   : > { %v2146_v8 = vrot.slane %v4400_v30, %v5206_v43  ;;  %2379 = vrot.lane.b32.xlu1 %v2142_v36, %s3651_s13  ;;  %v4425_v59 = vcombine.high %v4400_v30, %v4400_v30  ;;  %v4433_v51 = vrot.slane %v1716_v10, %v3915_v38  ;;  %v2150_v9 = vrot.slane %v4417_v28, %v5206_v43 }
 0x589   : > { %v2114_v20 = vrot.slane %v4407_v41, %v5206_v43  ;;  %v2158_v14 = vrot.slane %v4430_v26, %v5206_v43  ;;  %v1667_v32 = vcombine.high %v1665_v58, %v1665_v58  ;;  %v4453_v61 = vcombine.high %v4407_v41, %v4407_v41 }
 0x58a   : > { %2381 = vrot.lane.b32.xlu0 %v2146_v8, %s3651_s13  ;;  %v2154_v21 = vrot.slane %v4425_v59, %v5206_v43  ;;  %v2162_v55 = vrot.slane %v4433_v51, %v5206_v43  ;;  %v4458_v34 = vrot.slane %v1665_v58, %v3915_v38  ;;  %v2118_v1 = vrot.slane %v4444_v50, %v5206_v43 }
 0x58b   : > { %v4463_v12 = vrot.slane %v1667_v32, %v3915_v38  ;;  %v2122_v37 = vrot.slane %v4453_v61, %v5206_v43  ;;  %v4477_v22 = vcombine.high %v4430_v26, %v4430_v26  ;;  %v4484_v62 = vcombine.high %v4433_v51, %v4433_v51 }
 0x58c   : > { %2363 = vrot.lane.b32.xlu1 %v2110_v60, %s3651_s13  ;;  %v2126_v47 = vrot.slane %v4458_v34, %v5206_v43  ;;  %v4511_v2 = vcombine.high %v4458_v34, %v4458_v34 }
 0x58d   : > { %v2130_v39 = vrot.slane %v4463_v12, %v5206_v43  ;;  %v2166_v42 = vrot.slane %v4477_v22, %v5206_v43  ;;  %v2170_v0 = vrot.slane %v4484_v62, %v5206_v43  ;;  %v4517_v63 = vcombine.high %v4463_v12, %v4463_v12 }
 0x58e   : > { %2365 = vrot.lane.b32.xlu0 %v2114_v20, %s3651_s13  ;;  %v2134_v19 = vrot.slane %v4511_v2, %v5206_v43 }
 0x58f   : > { %v2138_v46 = vrot.slane %v4517_v63, %v5206_v43 }
 0x590   : > { %2383 = vrot.lane.b32.xlu1 %v2150_v9, %s3651_s13 }
 0x592   : > { %2385 = vrot.lane.b32.xlu0 %v2154_v21, %s3651_s13 }
 0x593   : > { %v3565_v17 = vpop.f32.mrb[2].mxu0 }
 0x594   : > { %v1614_v24 = vpop.f32.mrb[3].mxu0  ;;  %v1620_v3 = vadd.f32 %v3565_v17, %v4390_v25  ;;  %2387 = vrot.lane.b32.xlu1 %v2158_v14, %s3651_s13 }
 0x595   : > { %v1615_v57 = vadd.f32 %v4390_v25, %v1614_v24 }
 0x596   : > { %2389 = vrot.lane.b32.xlu0 %v2162_v55, %s3651_s13  ;;  %v1805_v56 = vrot.slane %v1620_v3, %v3915_v38  ;;  %v1798_v35 = vcombine.high %v1620_v3, %v1620_v3 }
 0x597   : > { %v3568_v31 = vpop.f32.mrb[4].mxu0  ;;  %v1756_v33 = vrot.slane %v1615_v57, %v3915_v38  ;;  %v1749_v8 = vcombine.high %v1615_v57, %v1615_v57 }
 0x598   : > { %v1624_v16 = vpop.f32.mrb[5].mxu0  ;;  %2367 = vrot.lane.b32.xlu1 %v2118_v1, %s3651_s13  ;;  %v1813_v13 = vcombine.high %v1805_v56, %v1805_v56  ;;  %v4492_v7 = vrot.slane %v1805_v56, %v3915_v38  ;;  %v1812_v11 = vrot.slane %v1798_v35, %v3915_v38  ;;  %v1630_v55 = vadd.f32 %v3568_v31, %v4390_v25 }
 0x599   : > { %v4467_v29 = vadd.f32 %v4390_v25, %v1624_v16  ;;  %v1764_v44 = vcombine.high %v1756_v33, %v1756_v33  ;;  %v4522_v48 = vrot.slane %v1756_v33, %v3915_v38  ;;  %v1763_v21 = vrot.slane %v1749_v8, %v3915_v38 }
 0x59a   : > { %2369 = vrot.lane.b32.xlu0 %v2122_v37, %s3651_s13  ;;  %v4497_v54 = vrot.slane %v1813_v13, %v3915_v38  ;;  %v2206_v15 = vrot.slane %v4492_v7, %v5206_v43  ;;  %v4536_v52 = vcombine.high %v4492_v7, %v4492_v7  ;;  %v1814_v36 = vcombine.high %v1812_v11, %v1812_v11 }
 0x59b   : > { %v4528_v45 = vrot.slane %v1764_v44, %v3915_v38  ;;  %v2174_v53 = vrot.slane %v4522_v48, %v5206_v43  ;;  %v4549_v20 = vrot.slane %v1812_v11, %v3915_v38  ;;  %v4563_v17 = vcombine.high %v4522_v48, %v4522_v48 }
 0x59c   : > { %2371 = vrot.lane.b32.xlu1 %v2126_v47, %s3651_s13  ;;  %v2210_v4 = vrot.slane %v4497_v54, %v5206_v43  ;;  %v4544_v60 = vcombine.high %v4497_v54, %v4497_v54  ;;  %v2214_v18 = vrot.slane %v4536_v52, %v5206_v43  ;;  %v4554_v9 = vrot.slane %v1814_v36, %v3915_v38 }
 0x59d   : > { %v2178_v10 = vrot.slane %v4528_v45, %v5206_v43  ;;  %v2222_v14 = vrot.slane %v4549_v20, %v5206_v43  ;;  %v1765_v24 = vcombine.high %v1763_v21, %v1763_v21  ;;  %v4572_v3 = vcombine.high %v4528_v45, %v4528_v45 }
 0x59e   : > { %v3571_v27 = vpop.f32.mrb[6].mxu0  ;;  %2373 = vrot.lane.b32.xlu0 %v2130_v39, %s3651_s13  ;;  %v2218_v58 = vrot.slane %v4544_v60, %v5206_v43  ;;  %v2226_v32 = vrot.slane %v4554_v9, %v5206_v43  ;;  %v4577_v1 = vrot.slane %v1763_v21, %v3915_v38  ;;  %v2182_v16 = vrot.slane %v4563_v17, %v5206_v43 }
 0x59f   : > { %v4489_v40 = vadd.f32 %v3571_v27, %v4390_v25  ;;  %v1634_v5 = vpop.f32.mrb[7].mxu0  ;;  %v4582_v56 = vrot.slane %v1765_v24, %v3915_v38  ;;  %v2186_v31 = vrot.slane %v4572_v3, %v5206_v43  ;;  %v4593_v47 = vcombine.high %v4549_v20, %v4549_v20 }
 0x5a0   : > { %v4503_v6 = vadd.f32 %v4390_v25, %v1634_v5  ;;  %2391 = vrot.lane.b32.xlu1 %v2166_v42, %s3651_s13  ;;  %v1903_v25 = vrot.slane %v1630_v55, %v3915_v38  ;;  %v2190_v37 = vrot.slane %v4577_v1, %v5206_v43  ;;  %v4599_v39 = vcombine.high %v4554_v9, %v4554_v9 }
 0x5a1   : > { %v2194_v57 = vrot.slane %v4582_v56, %v5206_v43  ;;  %v2230_v5 = vrot.slane %v4593_v47, %v5206_v43  ;;  %v1854_v33 = vrot.slane %v4467_v29, %v3915_v38  ;;  %v4621_v35 = vcombine.high %v4577_v1, %v4577_v1 }
 0x5a2   : > { %2393 = vrot.lane.b32.xlu0 %v2170_v0, %s3651_s13  ;;  %v1911_v13 = vcombine.high %v1903_v25, %v1903_v25  ;;  %v4604_v27 = vrot.slane %v1903_v25, %v3915_v38  ;;  %v2234_v0 = vrot.slane %v4599_v39, %v5206_v43  ;;  %v1896_v44 = vcombine.high %v1630_v55, %v1630_v55 }
 0x5a3   : > { %v4627_v11 = vcombine.high %v4582_v56, %v4582_v56 }
 0x5a4   : > { %2411 = vrot.lane.b32.xlu1 %v2206_v15, %s3651_s13  ;;  %v4609_v42 = vrot.slane %v1911_v13, %v3915_v38  ;;  %v2270_v15 = vrot.slane %v4604_v27, %v5206_v43  ;;  %v1910_v36 = vrot.slane %v1896_v44, %v3915_v38 }
 0x5a6   : > { %2413 = vrot.lane.b32.xlu0 %v2210_v4, %s3651_s13  ;;  %v1862_v4 = vcombine.high %v1854_v33, %v1854_v33  ;;  %v4656_v55 = vcombine.high %v4609_v42, %v4609_v42 }
 0x5a8   : > { %2375 = vrot.lane.b32.xlu1 %v2134_v19, %s3651_s13  ;;  %v2274_v19 = vrot.slane %v4609_v42, %v5206_v43  ;;  %v4638_v8 = vrot.slane %v1862_v4, %v3915_v38  ;;  %v2001_v4 = vrot.slane %v4489_v40, %v3915_v38 }
 0x5aa   : > { %2377 = vrot.lane.b32.xlu0 %v2138_v46, %s3651_s13  ;;  %v4632_v46 = vrot.slane %v1854_v33, %v3915_v38  ;;  %v2242_v24 = vrot.slane %v4638_v8, %v5206_v43  ;;  %v4683_v33 = vcombine.high %v4638_v8, %v4638_v8 }
 0x5ac   : > { %2395 = vrot.lane.b32.xlu1 %v2174_v53, %s3651_s13  ;;  %v2198_v53 = vrot.slane %v4621_v35, %v5206_v43  ;;  %v2238_v21 = vrot.slane %v4632_v46, %v5206_v43 }
 0x5ae   : > { %2397 = vrot.lane.b32.xlu0 %v2178_v10, %s3651_s13  ;;  %v2202_v10 = vrot.slane %v4627_v11, %v5206_v43 }
 0x5b0   : > { %2415 = vrot.lane.b32.xlu1 %v2214_v18, %s3651_s13  ;;  %v4646_v18 = vcombine.high %v4604_v27, %v4604_v27 }
 0x5b2   : > { %2417 = vrot.lane.b32.xlu0 %v2218_v58, %s3651_s13  ;;  %v1912_v58 = vcombine.high %v1910_v36, %v1910_v36 }
 0x5b4   : > { %2419 = vrot.lane.b32.xlu1 %v2222_v14, %s3651_s13  ;;  %v1847_v14 = vcombine.high %v4467_v29, %v4467_v29  ;;  %v4666_v25 = vrot.slane %v1912_v58, %v3915_v38 }
 0x5b6   : > { %2421 = vrot.lane.b32.xlu0 %v2226_v32, %s3651_s13  ;;  %v4661_v32 = vrot.slane %v1910_v36, %v3915_v38  ;;  %v1861_v29 = vrot.slane %v1847_v14, %v3915_v38  ;;  %v4711_v58 = vcombine.high %v4666_v25, %v4666_v25  ;;  %v4716_v14 = vrot.slane %v2001_v4, %v3915_v38 }
 0x5b8   : > { %2399 = vrot.lane.b32.xlu1 %v2182_v16, %s3651_s13  ;;  %v2278_v16 = vrot.slane %v4646_v18, %v5206_v43  ;;  %v2286_v13 = vrot.slane %v4661_v32, %v5206_v43  ;;  %v4705_v36 = vcombine.high %v4661_v32, %v4661_v32  ;;  %5207 = vst [vmem:[#allocation2_spill] sm:$0xff] %v4716_v14 }
 0x5ba   : > { %2401 = vrot.lane.b32.xlu0 %v2186_v31, %s3651_s13  ;;  %v2282_v31 = vrot.slane %v4656_v55, %v5206_v43 }
 0x5bc   : > { %2403 = vrot.lane.b32.xlu1 %v2190_v37, %s3651_s13  ;;  %v4675_v37 = vcombine.high %v4632_v46, %v4632_v46 }
 0x5be   : > { %2405 = vrot.lane.b32.xlu0 %v2194_v57, %s3651_s13  ;;  %v1863_v57 = vcombine.high %v1861_v29, %v1861_v29 }
 0x5c0   : > { %2423 = vrot.lane.b32.xlu1 %v2230_v5, %s3651_s13  ;;  %v2290_v5 = vrot.slane %v4666_v25, %v5206_v43  ;;  %v4693_v44 = vrot.slane %v1863_v57, %v3915_v38 }
 0x5c2   : > { %2425 = vrot.lane.b32.xlu0 %v2234_v0, %s3651_s13  ;;  %v4688_v0 = vrot.slane %v1861_v29, %v3915_v38  ;;  %v1952_v29 = vrot.slane %v4503_v6, %v3915_v38 }
 0x5c4   : > { %2443 = vrot.lane.b32.xlu1 %v2270_v15, %s3651_s13  ;;  %v2246_v15 = vrot.slane %v4675_v37, %v5206_v43  ;;  %v4733_v57 = vcombine.high %v4688_v0, %v4688_v0 }
 0x5c6   : > { %2445 = vrot.lane.b32.xlu0 %v2274_v19, %s3651_s13  ;;  %v2250_v19 = vrot.slane %v4683_v33, %v5206_v43 }
 0x5c8   : > { %2407 = vrot.lane.b32.xlu1 %v2198_v53, %s3651_s13  ;;  %v2254_v53 = vrot.slane %v4688_v0, %v5206_v43 }
 0x5ca   : > { %2409 = vrot.lane.b32.xlu0 %v2202_v10, %s3651_s13  ;;  %v2009_v10 = vcombine.high %v2001_v4, %v2001_v4 }
 0x5cc   : > { %2427 = vrot.lane.b32.xlu1 %v2238_v21, %s3651_s13  ;;  %v2258_v21 = vrot.slane %v4693_v44, %v5206_v43 }
 0x5ce   : > { %2429 = vrot.lane.b32.xlu0 %v2242_v24, %s3651_s13  ;;  %v2294_v24 = vrot.slane %v4705_v36, %v5206_v43 }
 0x5d0   : > { %2447 = vrot.lane.b32.xlu1 %v2278_v16, %s3651_s13  ;;  %v4721_v16 = vrot.slane %v2009_v10, %v3915_v38  ;;  %v2262_v10 = vrot.slane %v4733_v57, %v5206_v43 }
 0x5d2   : > { %2449 = vrot.lane.b32.xlu0 %v2282_v31, %s3651_s13  ;;  %5208 = vst [vmem:[#allocation4_spill] sm:$0xff] %v4721_v16  ;;  %v2298_v31 = vrot.slane %v4711_v58, %v5206_v43  ;;  %v2338_v4 = vrot.slane %v4721_v16, %v5206_v43 }
 0x5d4   : > { %2451 = vrot.lane.b32.xlu1 %v2286_v13, %s3651_s13  ;;  %v2334_v13 = vrot.slane %v4716_v14, %v5206_v43 }
 0x5d6   : > { %2453 = vrot.lane.b32.xlu0 %v2290_v5, %s3651_s13  ;;  %v1994_v5 = vcombine.high %v4489_v40, %v4489_v40 }
 0x5d8   : > { %2431 = vrot.lane.b32.xlu1 %v2246_v15, %s3651_s13  ;;  %v1960_v15 = vcombine.high %v1952_v29, %v1952_v29  ;;  %v2008_v40 = vrot.slane %v1994_v5, %v3915_v38  ;;  %v1945_v5 = vcombine.high %v4503_v6, %v4503_v6 }
 0x5da   : > { %2433 = vrot.lane.b32.xlu0 %v2250_v19, %s3651_s13  ;;  %v4741_v19 = vcombine.high %v4693_v44, %v4693_v44  ;;  %v1959_v6 = vrot.slane %v1945_v5, %v3915_v38 }
 0x5dc   : > { %2435 = vrot.lane.b32.xlu1 %v2254_v53, %s3651_s13  ;;  %5209 = vst [vmem:[#allocation5_spill] sm:$0xff] %v4741_v19  ;;  %v4746_v53 = vrot.slane %v1952_v29, %v3915_v38 }
 0x5de   : > { %2437 = vrot.lane.b32.xlu0 %v2258_v21, %s3651_s13  ;;  %5210 = vst [vmem:[#allocation6_spill] sm:$0xff] %v4746_v53  ;;  %v4752_v21 = vrot.slane %v1960_v15, %v3915_v38  ;;  %v2302_v29 = vrot.slane %v4746_v53, %v5206_v43 }
 0x5e0   : > { %2455 = vrot.lane.b32.xlu1 %v2294_v24, %s3651_s13  ;;  %5211 = vst [vmem:[#allocation7_spill] sm:$0xff] %v4752_v21  ;;  %v2266_v24 = vrot.slane %v4741_v19, %v5206_v43  ;;  %v2306_v15 = vrot.slane %v4752_v21, %v5206_v43  ;;  %v4797_v5 = vcombine.high %v4752_v21, %v4752_v21 }
 0x5e2   : > { %2457 = vrot.lane.b32.xlu0 %v2298_v31, %s3651_s13  ;;  %v4760_v31 = vcombine.high %v4716_v14, %v4716_v14  ;;  %5217 = vst [vmem:[#allocation13_spill] sm:$0xff] %v4797_v5 }
 0x5e4   : > { %2475 = vrot.lane.b32.xlu1 %v2334_v13, %s3651_s13  ;;  %5212 = vst [vmem:[#allocation8_spill] sm:$0xff] %v4760_v31  ;;  %v2010_v13 = vcombine.high %v2008_v40, %v2008_v40 }
 0x5e6   : > { %2477 = vrot.lane.b32.xlu0 %v2338_v4, %s3651_s13  ;;  %v4770_v4 = vcombine.high %v4721_v16, %v4721_v16  ;;  %v4780_v14 = vrot.slane %v2010_v13, %v3915_v38 }
 0x5e8   : > { %2439 = vrot.lane.b32.xlu1 %v2262_v10, %s3651_s13  ;;  %5213 = vst [vmem:[#allocation9_spill] sm:$0xff] %v4770_v4  ;;  %v4775_v10 = vrot.slane %v2008_v40, %v3915_v38  ;;  %5215 = vst [vmem:[#allocation11_spill] sm:$0xff] %v4780_v14  ;;  %v2346_v19 = vrot.slane %v4770_v4, %v5206_v43  ;;  %v2354_v13 = vrot.slane %v4780_v14, %v5206_v43 }
 0x5e9   : > { %v2314_v4 = vrot.slane %v4797_v5, %v5206_v43 }
 0x5ea   : > { %2441 = vrot.lane.b32.xlu0 %v2266_v24, %s3651_s13  ;;  %5214 = vst [vmem:[#allocation10_spill] sm:$0xff] %v4775_v10  ;;  %v2342_v24 = vrot.slane %v4760_v31, %v5206_v43  ;;  %v2350_v40 = vrot.slane %v4775_v10, %v5206_v43 }
 0x5ec   : > { %2459 = vrot.lane.b32.xlu1 %v2302_v29, %s3651_s13  ;;  %v4789_v29 = vcombine.high %v4746_v53, %v4746_v53 }
 0x5ee   : > { %2461 = vrot.lane.b32.xlu0 %v2306_v15, %s3651_s13  ;;  %5216 = vst [vmem:[#allocation12_spill] sm:$0xff] %v4789_v29  ;;  %v1961_v15 = vcombine.high %v1959_v6, %v1959_v6 }
 0x5f0   : > { %2479 = vrot.lane.b32.xlu1 %v2342_v24, %s3651_s13  ;;  %v2310_v24 = vrot.slane %v4789_v29, %v5206_v43  ;;  %v4807_v53 = vrot.slane %v1961_v15, %v3915_v38  ;;  %v4823_v15 = vcombine.high %v4780_v14, %v4780_v14 }
 0x5f2   : > { %2481 = vrot.lane.b32.xlu0 %v2346_v19, %s3651_s13  ;;  %v4802_v19 = vrot.slane %v1959_v6, %v3915_v38  ;;  %5219 = vst [vmem:[#allocation15_spill] sm:$0xff] %v4807_v53  ;;  %v4817_v6 = vcombine.high %v4775_v10, %v4775_v10  ;;  %v2322_v38 = vrot.slane %v4807_v53, %v5206_v43  ;;  %5221 = vst [vmem:[#allocation17_spill] sm:$0xff] %v4823_v15 }
 0x5f3   : > { %v2362_v14 = vrot.slane %v4823_v15, %v5206_v43 }
 0x5f4   : > { %2483 = vrot.lane.b32.xlu1 %v2350_v40, %s3651_s13  ;;  %5218 = vst [vmem:[#allocation14_spill] sm:$0xff] %v4802_v19  ;;  %v2318_v40 = vrot.slane %v4802_v19, %v5206_v43  ;;  %5220 = vst [vmem:[#allocation16_spill] sm:$0xff] %v4817_v6  ;;  %v4831_v10 = vcombine.high %v4802_v19, %v4802_v19 }
 0x5f6   : > { %2485 = vrot.lane.b32.xlu0 %v2354_v13, %s3651_s13  ;;  %5222 = vst [vmem:[#allocation18_spill] sm:$0xff] %v4831_v10  ;;  %v2326_v31 = vrot.slane %v4831_v10, %v5206_v43 }
 0x5f8   : > { %2463 = vrot.lane.b32.xlu1 %v2310_v24, %s3651_s13  ;;  %v2358_v24 = vrot.slane %v4817_v6, %v5206_v43 }
 0x5fa   : > { %2465 = vrot.lane.b32.xlu0 %v2314_v4, %s3651_s13  ;;  %v2380_v21 = vpop.permute.xlu1 %2379 }
 0x5fc   : > { %v2382_v13 = vpop.permute.xlu0 %2381  ;;  %2467 = vrot.lane.b32.xlu1 %v2318_v40, %s3651_s13  ;;  %v4839_v40 = vcombine.high %v4807_v53, %v4807_v53 }
 0x5fd   : > { %v2564_v29 = vsel %vm405_vm2, %v4400_v30, %v2382_v13 }
 0x5fe   : > { %2469 = vrot.lane.b32.xlu0 %v2322_v38, %s3651_s13  ;;  %v2364_v4 = vpop.permute.xlu1 %2363  ;;  %v2563_v38 = vsel %vm405_vm2, %v4397_v49, %v2380_v21 }
 0x5ff   : > { %v2879_v6 = vcombine.low %v2563_v38, %v2564_v29 }
 0x600   : > { %v2366_v5 = vpop.permute.xlu0 %2365  ;;  %2487 = vrot.lane.b32.xlu1 %v2358_v24, %s3651_s13  ;;  %v2330_v24 = vrot.slane %v4839_v40, %v5206_v43 }
 0x601   : > { %v2556_v43 = vsel %vm405_vm2, %v4407_v41, %v2366_v5 }
 0x602   : > { %2489 = vrot.lane.b32.xlu0 %v2362_v14, %s3651_s13  ;;  %v2384_v19 = vpop.permute.xlu1 %2383  ;;  %v5223_v14 = vld [vmem:[#allocation3_spill] sm:$0xff] }
 0x603   : > { %v2565_v13 = vsel %vm405_vm2, %v4417_v28, %v2384_v19  ;;  %v2887_v21 = vrot.slane %v2879_v6, %v5223_v14 }
 0x604   : > { %v2386_v30 = vpop.permute.xlu0 %2385  ;;  %2471 = vrot.lane.b32.xlu1 %v2326_v31, %s3651_s13 }
 0x605   : > { %v2566_v15 = vsel %vm405_vm2, %v4425_v59, %v2386_v30  ;;  %v2555_v59 = vsel %vm405_vm2, %v4404_v23, %v2364_v4 }
 0x606   : > { %v2880_v49 = vcombine.low %v2565_v13, %v2566_v15  ;;  %2473 = vrot.lane.b32.xlu0 %v2330_v24, %s3651_s13  ;;  %v2388_v53 = vpop.permute.xlu1 %2387  ;;  %v2811_v19 = vcombine.low %v2555_v59, %v2556_v43 }
 0x608   : > { %v2894_v10 = vrot.slane %v2880_v49, %v5223_v14  ;;  %v2390_v16 = vpop.permute.xlu0 %2389  ;;  %2699 = vrot.lane.b32.xlu1 %v2563_v38, %s3653_s15  ;;  %v2819_v23 = vrot.slane %v2811_v19, %v5223_v14 }
 0x609   : > { %v2568_v38 = vsel %vm405_vm2, %v4433_v51, %v2390_v16 }
 0x60a   : > { %v2895_v28 = vcombine.low %v2887_v21, %v2894_v10  ;;  %2701 = vrot.lane.b32.xlu0 %v2564_v29, %s3653_s15  ;;  %v2368_v31 = vpop.permute.xlu1 %2367 }
 0x60b   : > { %v2557_v30 = vsel %vm405_vm2, %v4444_v50, %v2368_v31 }
 0x60c   : > { %3391 = vst.msk [vmem:[%s4861_s12 + $0x20] sm:$0xff] %vm562_vm9, %v2895_v28  ;;  %v2370_v6 = vpop.permute.xlu0 %2369  ;;  %2683 = vrot.lane.b32.xlu1 %v2555_v59, %s3653_s15 }
 0x60d   : > { %v2558_v41 = vsel %vm405_vm2, %v4453_v61, %v2370_v6  ;;  %v2567_v61 = vsel %vm405_vm2, %v4430_v26, %v2388_v53 }
 0x60e   : > { %v2812_v10 = vcombine.low %v2557_v30, %v2558_v41  ;;  %2685 = vrot.lane.b32.xlu0 %v2556_v43, %s3653_s15  ;;  %v2372_v29 = vpop.permute.xlu1 %2371  ;;  %v2896_v49 = vcombine.low %v2567_v61, %v2568_v38 }
 0x610   : > { %v2826_v5 = vrot.slane %v2812_v10, %v5223_v14  ;;  %v2374_v4 = vpop.permute.xlu0 %2373  ;;  %2703 = vrot.lane.b32.xlu1 %v2565_v13, %s3653_s15  ;;  %v2904_v26 = vrot.slane %v2896_v49, %v5223_v14 }
 0x611   : > { %v2560_v28 = vsel %vm405_vm2, %v4463_v12, %v2374_v4 }
 0x612   : > { %v2827_v50 = vcombine.low %v2819_v23, %v2826_v5  ;;  %2705 = vrot.lane.b32.xlu0 %v2566_v15, %s3653_s15  ;;  %v2392_v24 = vpop.permute.xlu1 %2391 }
 0x613   : > { %v2569_v43 = vsel %vm405_vm2, %v4477_v22, %v2392_v24 }
 0x614   : > { %3387 = vst.msk [vmem:[%s4861_s12] sm:$0xff] %vm562_vm9, %v2827_v50  ;;  %v2394_v21 = vpop.permute.xlu0 %2393  ;;  %2707 = vrot.lane.b32.xlu1 %v2567_v61, %s3653_s15 }
 0x615   : > { %v2570_v51 = vsel %vm405_vm2, %v4484_v62, %v2394_v21  ;;  %v2559_v62 = vsel %vm405_vm2, %v4458_v34, %v2372_v29 }
 0x616   : > { %v2897_v16 = vcombine.low %v2569_v43, %v2570_v51  ;;  %2709 = vrot.lane.b32.xlu0 %v2568_v38, %s3653_s15  ;;  %v2412_v15 = vpop.permute.xlu1 %2411  ;;  %v2828_v31 = vcombine.low %v2559_v62, %v2560_v28 }
 0x618   : > { %v2911_v53 = vrot.slane %v2897_v16, %v5223_v14  ;;  %v2414_v13 = vpop.permute.xlu0 %2413  ;;  %2687 = vrot.lane.b32.xlu1 %v2557_v30, %s3653_s15  ;;  %v2836_v34 = vrot.slane %v2828_v31, %v5223_v14 }
 0x619   : > { %v2580_v23 = vsel %vm405_vm2, %v4497_v54, %v2414_v13 }
 0x61a   : > { %v2912_v22 = vcombine.low %v2904_v26, %v2911_v53  ;;  %2689 = vrot.lane.b32.xlu0 %v2558_v41, %s3653_s15  ;;  %v2376_v59 = vpop.permute.xlu1 %2375 }
 0x61b   : > { %v2561_v6 = vsel %vm405_vm2, %v4511_v2, %v2376_v59 }
 0x61c   : > { %3392 = vst.msk [vmem:[%s4861_s12 + $0x28] sm:$0xff] %vm562_vm9, %v2912_v22  ;;  %v2378_v19 = vpop.permute.xlu0 %2377  ;;  %2691 = vrot.lane.b32.xlu1 %v2559_v62, %s3653_s15 }
 0x61d   : > { %v2562_v12 = vsel %vm405_vm2, %v4517_v63, %v2378_v19  ;;  %v2579_v63 = vsel %vm405_vm2, %v4492_v7, %v2412_v15 }
 0x61e   : > { %v2829_v30 = vcombine.low %v2561_v6, %v2562_v12  ;;  %2693 = vrot.lane.b32.xlu0 %v2560_v28, %s3653_s15  ;;  %v2396_v41 = vpop.permute.xlu1 %2395  ;;  %v3015_v4 = vcombine.low %v2579_v63, %v2580_v23 }
 0x620   : > { %v2843_v10 = vrot.slane %v2829_v30, %v5223_v14  ;;  %v2398_v29 = vpop.permute.xlu0 %2397  ;;  %2711 = vrot.lane.b32.xlu1 %v2569_v43, %s3653_s15  ;;  %v3023_v7 = vrot.slane %v3015_v4, %v5223_v14 }
 0x621   : > { %v2572_v43 = vsel %vm405_vm2, %v4528_v45, %v2398_v29 }
 0x622   : > { %v2844_v2 = vcombine.low %v2836_v34, %v2843_v10  ;;  %2713 = vrot.lane.b32.xlu0 %v2570_v51, %s3653_s15  ;;  %v2416_v5 = vpop.permute.xlu1 %2415 }
 0x623   : > { %v2581_v50 = vsel %vm405_vm2, %v4536_v52, %v2416_v5 }
 0x624   : > { %3388 = vst.msk [vmem:[%s4861_s12 + $0x8] sm:$0xff] %vm562_vm9, %v2844_v2  ;;  %v2418_v38 = vpop.permute.xlu0 %2417  ;;  %2731 = vrot.lane.b32.xlu1 %v2579_v63, %s3653_s15 }
 0x625   : > { %v2582_v54 = vsel %vm405_vm2, %v4544_v60, %v2418_v38  ;;  %v2571_v60 = vsel %vm405_vm2, %v4522_v48, %v2396_v41 }
 0x626   : > { %v3016_v61 = vcombine.low %v2581_v50, %v2582_v54  ;;  %2733 = vrot.lane.b32.xlu0 %v2580_v23, %s3653_s15  ;;  %v2420_v24 = vpop.permute.xlu1 %2419  ;;  %v2947_v16 = vcombine.low %v2571_v60, %v2572_v43 }
 0x628   : > { %v3030_v49 = vrot.slane %v3016_v61, %v5223_v14  ;;  %v2422_v21 = vpop.permute.xlu0 %2421  ;;  %2695 = vrot.lane.b32.xlu1 %v2561_v6, %s3653_s15  ;;  %v2955_v48 = vrot.slane %v2947_v16, %v5223_v14 }
 0x629   : > { %v2584_v62 = vsel %vm405_vm2, %v4554_v9, %v2422_v21 }
 0x62a   : > { %v3031_v52 = vcombine.low %v3023_v7, %v3030_v49  ;;  %2697 = vrot.lane.b32.xlu0 %v2562_v12, %s3653_s15  ;;  %v2400_v51 = vpop.permute.xlu1 %2399 }
 0x62b   : > { %v2573_v26 = vsel %vm405_vm2, %v4563_v17, %v2400_v51 }
 0x62c   : > { %3399 = vst.msk [vmem:[%s4861_s12 + $0x60] sm:$0xff] %vm562_vm9, %v3031_v52  ;;  %v2402_v15 = vpop.permute.xlu0 %2401  ;;  %2715 = vrot.lane.b32.xlu1 %v2571_v60, %s3653_s15 }
 0x62d   : > { %v2574_v45 = vsel %vm405_vm2, %v4572_v3, %v2402_v15  ;;  %v2583_v3 = vsel %vm405_vm2, %v4549_v20, %v2420_v24 }
 0x62e   : > { %v2948_v53 = vcombine.low %v2573_v26, %v2574_v45  ;;  %2717 = vrot.lane.b32.xlu0 %v2572_v43, %s3653_s15  ;;  %v2404_v13 = vpop.permute.xlu1 %2403  ;;  %v3032_v31 = vcombine.low %v2583_v3, %v2584_v62 }
 0x630   : > { %v2962_v28 = vrot.slane %v2948_v53, %v5223_v14  ;;  %v2406_v22 = vpop.permute.xlu0 %2405  ;;  %2735 = vrot.lane.b32.xlu1 %v2581_v50, %s3653_s15  ;;  %v3040_v20 = vrot.slane %v3032_v31, %v5223_v14 }
 0x631   : > { %v2576_v10 = vsel %vm405_vm2, %v4582_v56, %v2406_v22 }
 0x632   : > { %v2963_v17 = vcombine.low %v2955_v48, %v2962_v28  ;;  %2737 = vrot.lane.b32.xlu0 %v2582_v54, %s3653_s15  ;;  %v2424_v59 = vpop.permute.xlu1 %2423 }
 0x633   : > { %v2585_v6 = vsel %vm405_vm2, %v4593_v47, %v2424_v59 }
 0x634   : > { %3395 = vst.msk [vmem:[%s4861_s12 + $0x40] sm:$0xff] %vm562_vm9, %v2963_v17  ;;  %v2426_v19 = vpop.permute.xlu0 %2425  ;;  %2739 = vrot.lane.b32.xlu1 %v2583_v3, %s3653_s15 }
 0x635   : > { %v2586_v9 = vsel %vm405_vm2, %v4599_v39, %v2426_v19  ;;  %v2575_v39 = vsel %vm405_vm2, %v4577_v1, %v2404_v13 }
 0x636   : > { %v3033_v12 = vcombine.low %v2585_v6, %v2586_v9  ;;  %2741 = vrot.lane.b32.xlu0 %v2584_v62, %s3653_s15  ;;  %v2444_v30 = vpop.permute.xlu1 %2443  ;;  %v2964_v23 = vcombine.low %v2575_v39, %v2576_v10 }
 0x638   : > { %v3047_v41 = vrot.slane %v3033_v12, %v5223_v14  ;;  %v2446_v34 = vpop.permute.xlu0 %2445  ;;  %2719 = vrot.lane.b32.xlu1 %v2573_v26, %s3653_s15  ;;  %v2972_v1 = vrot.slane %v2964_v23, %v5223_v14 }
 0x639   : > { %v2596_v54 = vsel %vm405_vm2, %v4609_v42, %v2446_v34 }
 0x63a   : > { %v3048_v47 = vcombine.low %v3040_v20, %v3047_v41  ;;  %2721 = vrot.lane.b32.xlu0 %v2574_v45, %s3653_s15  ;;  %v2408_v29 = vpop.permute.xlu1 %2407 }
 0x63b   : > { %v2577_v63 = vsel %vm405_vm2, %v4621_v35, %v2408_v29 }
 0x63c   : > { %3400 = vst.msk [vmem:[%s4861_s12 + $0x68] sm:$0xff] %vm562_vm9, %v3048_v47  ;;  %v2410_v2 = vpop.permute.xlu0 %2409  ;;  %2723 = vrot.lane.b32.xlu1 %v2575_v39, %s3653_s15 }
 0x63d   : > { %v2578_v56 = vsel %vm405_vm2, %v4627_v11, %v2410_v2  ;;  %v2595_v11 = vsel %vm405_vm2, %v4604_v27, %v2444_v30  ;;  %v5225_v2 = vld [vmem:[#allocation4_spill] sm:$0xff] }
 0x63e   : > { %v2965_v5 = vcombine.low %v2577_v63, %v2578_v56  ;;  %2725 = vrot.lane.b32.xlu0 %v2576_v10, %s3653_s15  ;;  %v2428_v4 = vpop.permute.xlu1 %2427  ;;  %v3151_v24 = vcombine.low %v2595_v11, %v2596_v54 }
 0x640   : > { %v2979_v38 = vrot.slane %v2965_v5, %v5223_v14  ;;  %v2430_v50 = vpop.permute.xlu0 %2429  ;;  %2743 = vrot.lane.b32.xlu1 %v2585_v6, %s3653_s15  ;;  %v3159_v27 = vrot.slane %v3151_v24, %v5223_v14 }
 0x641   : > { %v2588_v51 = vsel %vm405_vm2, %v4638_v8, %v2430_v50  ;;  %v5227_v50 = vld [vmem:[#allocation8_spill] sm:$0xff] }
 0x642   : > { %v2980_v35 = vcombine.low %v2972_v1, %v2979_v38  ;;  %2745 = vrot.lane.b32.xlu0 %v2586_v9, %s3653_s15  ;;  %v2448_v61 = vpop.permute.xlu1 %2447 }
 0x643   : > { %v2597_v49 = vsel %vm405_vm2, %v4646_v18, %v2448_v61 }
 0x644   : > { %3396 = vst.msk [vmem:[%s4861_s12 + $0x48] sm:$0xff] %vm562_vm9, %v2980_v35  ;;  %v2450_v7 = vpop.permute.xlu0 %2449  ;;  %2763 = vrot.lane.b32.xlu1 %v2595_v11, %s3653_s15  ;;  %v5228_v35 = vld [vmem:[#allocation9_spill] sm:$0xff] }
 0x645   : > { %v2598_v42 = vsel %vm405_vm2, %v4656_v55, %v2450_v7  ;;  %v2587_v55 = vsel %vm405_vm2, %v4632_v46, %v2428_v4 }
 0x646   : > { %v3152_v21 = vcombine.low %v2597_v49, %v2598_v42  ;;  %2765 = vrot.lane.b32.xlu0 %v2596_v54, %s3653_s15  ;;  %v2452_v43 = vpop.permute.xlu1 %2451  ;;  %v3083_v15 = vcombine.low %v2587_v55, %v2588_v51 }
 0x648   : > { %v3166_v52 = vrot.slane %v3152_v21, %v5223_v14  ;;  %v2454_v60 = vpop.permute.xlu0 %2453  ;;  %2727 = vrot.lane.b32.xlu1 %v2577_v63, %s3653_s15  ;;  %v3091_v46 = vrot.slane %v3083_v15, %v5223_v14  ;;  %v5229_v21 = vld [vmem:[#allocation7_spill] sm:$0xff] }
 0x649   : > { %v2600_v22 = vsel %vm405_vm2, %v4666_v25, %v2454_v60 }
 0x64a   : > { %v3167_v18 = vcombine.low %v3159_v27, %v3166_v52  ;;  %2729 = vrot.lane.b32.xlu0 %v2578_v56, %s3653_s15  ;;  %v2432_v16 = vpop.permute.xlu1 %2431  ;;  %v5226_v56 = vld [vmem:[#allocation2_spill] sm:$0xff] }
 0x64b   : > { %v2589_v45 = vsel %vm405_vm2, %v4675_v37, %v2432_v16  ;;  %v5230_v52 = vld [vmem:[#allocation6_spill] sm:$0xff]  ;;  %v5231_v16 = vld [vmem:[#allocation12_spill] sm:$0xff] }
 0x64c   : > { %3407 = vst.msk [vmem:[%s4861_s12 + $0xa0] sm:$0xff] %vm562_vm9, %v3167_v18  ;;  %v2434_v26 = vpop.permute.xlu0 %2433  ;;  %2747 = vrot.lane.b32.xlu1 %v2587_v55, %s3653_s15 }
 0x64d   : > { %v2590_v8 = vsel %vm405_vm2, %v4683_v33, %v2434_v26  ;;  %v2599_v33 = vsel %vm405_vm2, %v4661_v32, %v2452_v43  ;;  %v5232_v26 = vld [vmem:[#allocation13_spill] sm:$0xff] }
 0x64e   : > { %v3084_v53 = vcombine.low %v2589_v45, %v2590_v8  ;;  %2749 = vrot.lane.b32.xlu0 %v2588_v51, %s3653_s15  ;;  %v2436_v13 = vpop.permute.xlu1 %2435  ;;  %v3168_v17 = vcombine.low %v2599_v33, %v2600_v22 }
 0x650   : > { %v3098_v48 = vrot.slane %v3084_v53, %v5223_v14  ;;  %v2438_v28 = vpop.permute.xlu0 %2437  ;;  %2767 = vrot.lane.b32.xlu1 %v2597_v49, %s3653_s15  ;;  %v3176_v32 = vrot.slane %v3168_v17, %v5223_v14 }
 0x651   : > { %v2592_v12 = vsel %vm405_vm2, %v4693_v44, %v2438_v28  ;;  %v5224_v44 = vld [vmem:[#allocation5_spill] sm:$0xff]  ;;  %v5233_v28 = vld [vmem:[#allocation11_spill] sm:$0xff] }
 0x652   : > { %v3099_v37 = vcombine.low %v3091_v46, %v3098_v48  ;;  %2769 = vrot.lane.b32.xlu0 %v2598_v42, %s3653_s15  ;;  %v2456_v62 = vpop.permute.xlu1 %2455 }
 0x653   : > { %v2601_v59 = vsel %vm405_vm2, %v4705_v36, %v2456_v62 }
 0x654   : > { %3403 = vst.msk [vmem:[%s4861_s12 + $0x80] sm:$0xff] %vm562_vm9, %v3099_v37  ;;  %v2458_v3 = vpop.permute.xlu0 %2457  ;;  %2771 = vrot.lane.b32.xlu1 %v2599_v33, %s3653_s15  ;;  %v5234_v33 = vld [vmem:[#allocation10_spill] sm:$0xff] }
 0x655   : > { %v2602_v25 = vsel %vm405_vm2, %v4711_v58, %v2458_v3  ;;  %v2591_v58 = vsel %vm405_vm2, %v4688_v0, %v2436_v13 }
 0x656   : > { %v3169_v31 = vcombine.low %v2601_v59, %v2602_v25  ;;  %2773 = vrot.lane.b32.xlu0 %v2600_v22, %s3653_s15  ;;  %v2476_v19 = vpop.permute.xlu1 %2475  ;;  %v3100_v20 = vcombine.low %v2591_v58, %v2592_v12 }
 0x657   : > { %v2611_v5 = vsel %vm405_vm2, %v5226_v56, %v2476_v19  ;;  %v5236_v19 = vld [vmem:[#allocation16_spill] sm:$0xff] }
 0x658   : > { %v3183_v6 = vrot.slane %v3169_v31, %v5223_v14  ;;  %v2478_v9 = vpop.permute.xlu0 %2477  ;;  %2751 = vrot.lane.b32.xlu1 %v2589_v45, %s3653_s15  ;;  %v3108_v0 = vrot.slane %v3100_v20, %v5223_v14 }
 0x659   : > { %v2612_v63 = vsel %vm405_vm2, %v5225_v2, %v2478_v9 }
 0x65a   : > { %v3184_v36 = vcombine.low %v3176_v32, %v3183_v6  ;;  %2753 = vrot.lane.b32.xlu0 %v2590_v8, %s3653_s15  ;;  %v2440_v30 = vpop.permute.xlu1 %2439  ;;  %v3287_v1 = vcombine.low %v2611_v5, %v2612_v63  ;;  %v5237_v6 = vld [vmem:[#allocation17_spill] sm:$0xff] }
 0x65b   : > { %v2593_v34 = vsel %vm405_vm2, %v4733_v57, %v2440_v30 }
 0x65c   : > { %3408 = vst.msk [vmem:[%s4861_s12 + $0xa8] sm:$0xff] %vm562_vm9, %v3184_v36  ;;  %v2442_v41 = vpop.permute.xlu0 %2441  ;;  %2755 = vrot.lane.b32.xlu1 %v2591_v58, %s3653_s15  ;;  %v3295_v7 = vrot.slane %v3287_v1, %v5223_v14  ;;  %v5238_v36 = vld [vmem:[#allocation14_spill] sm:$0xff] }
 0x65d   : > { %v2594_v10 = vsel %vm405_vm2, %v5224_v44, %v2442_v41 }
 0x65e   : > { %v3101_v47 = vcombine.low %v2593_v34, %v2594_v10  ;;  %2757 = vrot.lane.b32.xlu0 %v2592_v12, %s3653_s15  ;;  %v2460_v39 = vpop.permute.xlu1 %2459 }
 0x65f   : > { %v2603_v60 = vsel %vm405_vm2, %v5230_v52, %v2460_v39 }
 0x660   : > { %v3115_v29 = vrot.slane %v3101_v47, %v5223_v14  ;;  %v2462_v23 = vpop.permute.xlu0 %2461  ;;  %2775 = vrot.lane.b32.xlu1 %v2601_v59, %s3653_s15 }
 0x661   : > { %v2604_v43 = vsel %vm405_vm2, %v5229_v21, %v2462_v23 }
 0x662   : > { %v3116_v57 = vcombine.low %v3108_v0, %v3115_v29  ;;  %2777 = vrot.lane.b32.xlu0 %v2602_v25, %s3653_s15  ;;  %v2480_v4 = vpop.permute.xlu1 %2479  ;;  %v3219_v18 = vcombine.low %v2603_v60, %v2604_v43  ;;  %v5235_v25 = vld [vmem:[#allocation15_spill] sm:$0xff] }
 0x663   : > { %v2613_v54 = vsel %vm405_vm2, %v5227_v50, %v2480_v4 }
 0x664   : > { %3404 = vst.msk [vmem:[%s4861_s12 + $0x88] sm:$0xff] %vm562_vm9, %v3116_v57  ;;  %v2482_v38 = vpop.permute.xlu0 %2481  ;;  %2795 = vrot.lane.b32.xlu1 %v2611_v5, %s3653_s15  ;;  %v3227_v13 = vrot.slane %v3219_v18, %v5223_v14 }
 0x665   : > { %v2614_v11 = vsel %vm405_vm2, %v5228_v35, %v2482_v38 }
 0x666   : > { %v3288_v61 = vcombine.low %v2613_v54, %v2614_v11  ;;  %2797 = vrot.lane.b32.xlu0 %v2612_v63, %s3653_s15  ;;  %v2484_v24 = vpop.permute.xlu1 %2483 }
 0x667   : > { %v2615_v62 = vsel %vm405_vm2, %v5234_v33, %v2484_v24 }
 0x668   : > { %v3302_v49 = vrot.slane %v3288_v61, %v5223_v14  ;;  %v2486_v42 = vpop.permute.xlu0 %2485  ;;  %2759 = vrot.lane.b32.xlu1 %v2593_v34, %s3653_s15 }
 0x669   : > { %v2616_v22 = vsel %vm405_vm2, %v5233_v28, %v2486_v42 }
 0x66a   : > { %v3303_v27 = vcombine.low %v3295_v7, %v3302_v49  ;;  %2761 = vrot.lane.b32.xlu0 %v2594_v10, %s3653_s15  ;;  %v2464_v51 = vpop.permute.xlu1 %2463  ;;  %v3304_v3 = vcombine.low %v2615_v62, %v2616_v22  ;;  %v5239_v10 = vld [vmem:[#allocation18_spill] sm:$0xff] }
 0x66b   : > { %v2605_v15 = vsel %vm405_vm2, %v5231_v16, %v2464_v51 }
 0x66c   : > { %3415 = vst.msk [vmem:[%s4861_s12 + $0xe0] sm:$0xff] %vm562_vm9, %v3303_v27  ;;  %v2466_v55 = vpop.permute.xlu0 %2465  ;;  %2779 = vrot.lane.b32.xlu1 %v2603_v60, %s3653_s15  ;;  %v3312_v20 = vrot.slane %v3304_v3, %v5223_v14 }
 0x66d   : > { %v2606_v45 = vsel %vm405_vm2, %v5232_v26, %v2466_v55 }
 0x66e   : > { %v3220_v8 = vcombine.low %v2605_v15, %v2606_v45  ;;  %2781 = vrot.lane.b32.xlu0 %v2604_v43, %s3653_s15  ;;  %v2468_v53 = vpop.permute.xlu1 %2467 }
 0x66f   : > { %v2607_v58 = vsel %vm405_vm2, %v5238_v36, %v2468_v53 }
 0x670   : > { %v3234_v46 = vrot.slane %v3220_v8, %v5223_v14  ;;  %v2470_v48 = vpop.permute.xlu0 %2469  ;;  %2799 = vrot.lane.b32.xlu1 %v2613_v54, %s3653_s15 }
 0x671   : > { %v2608_v31 = vsel %vm405_vm2, %v5235_v25, %v2470_v48 }
 0x672   : > { %v3235_v37 = vcombine.low %v3227_v13, %v3234_v46  ;;  %2801 = vrot.lane.b32.xlu0 %v2614_v11, %s3653_s15  ;;  %v2488_v17 = vpop.permute.xlu1 %2487  ;;  %v3236_v41 = vcombine.low %v2607_v58, %v2608_v31 }
 0x673   : > { %v2617_v32 = vsel %vm405_vm2, %v5236_v19, %v2488_v17 }
 0x674   : > { %3411 = vst.msk [vmem:[%s4861_s12 + $0xc0] sm:$0xff] %vm562_vm9, %v3235_v37  ;;  %v2490_v59 = vpop.permute.xlu0 %2489  ;;  %2803 = vrot.lane.b32.xlu1 %v2615_v62, %s3653_s15  ;;  %v3244_v2 = vrot.slane %v3236_v41, %v5223_v14 }
 0x675   : > { %v2618_v9 = vsel %vm405_vm2, %v5237_v6, %v2490_v59 }
 0x676   : > { %v3305_v12 = vcombine.low %v2617_v32, %v2618_v9  ;;  %2805 = vrot.lane.b32.xlu0 %v2616_v22, %s3653_s15  ;;  %v2472_v30 = vpop.permute.xlu1 %2471 }
 0x677   : > { %v2609_v47 = vsel %vm405_vm2, %v5239_v10, %v2472_v30 }
 0x678   : > { %v3319_v34 = vrot.slane %v3305_v12, %v5223_v14  ;;  %v2474_v44 = vpop.permute.xlu0 %2473  ;;  %2783 = vrot.lane.b32.xlu1 %v2605_v15, %s3653_s15 }
 0x679   : > { %v2610_v39 = vsel %vm405_vm2, %v4839_v40, %v2474_v44 }
 0x67a   : > { %v3320_v0 = vcombine.low %v3312_v20, %v3319_v34  ;;  %v3237_v29 = vcombine.low %v2609_v47, %v2610_v39  ;;  %2785 = vrot.lane.b32.xlu0 %v2606_v45, %s3653_s15  ;;  %v2700_v23 = vpop.permute.xlu1 %2699 }
 0x67c   : > { %3416 = vst.msk [vmem:[%s4861_s12 + $0xe8] sm:$0xff] %vm562_vm9, %v3320_v0  ;;  %v3251_v63 = vrot.slane %v3237_v29, %v5223_v14  ;;  %v2702_v57 = vpop.permute.xlu0 %2701  ;;  %2787 = vrot.lane.b32.xlu1 %v2607_v58, %s3653_s15 }
 0x67d   : > { %v2913_v4 = vcombine.low %v2700_v23, %v2702_v57 }
 0x67e   : > { %v3252_v56 = vcombine.low %v3244_v2, %v3251_v63  ;;  %2789 = vrot.lane.b32.xlu0 %v2608_v31, %s3653_s15  ;;  %v2684_v5 = vpop.permute.xlu1 %2683 }
 0x67f   : > { %v2921_v54 = vrot.slane %v2913_v4, %v5223_v14 }
 0x680   : > { %3412 = vst.msk [vmem:[%s4861_s12 + $0xc8] sm:$0xff] %vm562_vm9, %v3252_v56  ;;  %v2686_v40 = vpop.permute.xlu0 %2685  ;;  %2791 = vrot.lane.b32.xlu1 %v2609_v47, %s3653_s15 }
 0x681   : > { %v2845_v7 = vcombine.low %v2684_v5, %v2686_v40 }
 0x682   : > { %2793 = vrot.lane.b32.xlu0 %v2610_v39, %s3653_s15  ;;  %v2704_v1 = vpop.permute.xlu1 %2703 }
 0x683   : > { %v2853_v43 = vrot.slane %v2845_v7, %v5223_v14 }
 0x684   : > { %v2706_v38 = vpop.permute.xlu0 %2705  ;;  %2807 = vrot.lane.b32.xlu1 %v2617_v32, %s3653_s15 }
 0x685   : > { %v2914_v50 = vcombine.low %v2704_v1, %v2706_v38 }
 0x686   : > { %2809 = vrot.lane.b32.xlu0 %v2618_v9, %s3653_s15  ;;  %v2708_v11 = vpop.permute.xlu1 %2707 }
 0x687   : > { %v2928_v35 = vrot.slane %v2914_v50, %v5223_v14 }
 0x688   : > { %v2710_v61 = vpop.permute.xlu0 %2709 }
 0x689   : > { %v2929_v24 = vcombine.low %v2921_v54, %v2928_v35  ;;  %v2930_v18 = vcombine.low %v2708_v11, %v2710_v61 }
 0x68a   : > { %v2688_v49 = vpop.permute.xlu1 %2687 }
 0x68b   : > { %3393 = vst.msk [vmem:[%s4861_s12 + $0x30] sm:$0xff] %vm562_vm9, %v2929_v24  ;;  %v2938_v26 = vrot.slane %v2930_v18, %v5223_v14 }
 0x68c   : > { %v2690_v42 = vpop.permute.xlu0 %2689 }
 0x68d   : > { %v2846_v21 = vcombine.low %v2688_v49, %v2690_v42 }
 0x68e   : > { %v2692_v52 = vpop.permute.xlu1 %2691 }
 0x68f   : > { %v2860_v27 = vrot.slane %v2846_v21, %v5223_v14 }
 0x690   : > { %v2694_v60 = vpop.permute.xlu0 %2693 }
 0x691   : > { %v2861_v51 = vcombine.low %v2853_v43, %v2860_v27  ;;  %v2862_v46 = vcombine.low %v2692_v52, %v2694_v60 }
 0x692   : > { %v2712_v55 = vpop.permute.xlu1 %2711 }
 0x693   : > { %3389 = vst.msk [vmem:[%s4861_s12 + $0x10] sm:$0xff] %vm562_vm9, %v2861_v51  ;;  %v2870_v37 = vrot.slane %v2862_v46, %v5223_v14 }
 0x694   : > { %v2714_v16 = vpop.permute.xlu0 %2713 }
 0x695   : > { %v2931_v15 = vcombine.low %v2712_v55, %v2714_v16 }
 0x696   : > { %v2732_v8 = vpop.permute.xlu1 %2731 }
 0x697   : > { %v2945_v45 = vrot.slane %v2931_v15, %v5223_v14 }
 0x698   : > { %v2734_v53 = vpop.permute.xlu0 %2733 }
 0x699   : > { %v2946_v13 = vcombine.low %v2938_v26, %v2945_v45  ;;  %v3049_v59 = vcombine.low %v2732_v8, %v2734_v53 }
 0x69a   : > { %v2696_v48 = vpop.permute.xlu1 %2695 }
 0x69b   : > { %3394 = vst.msk [vmem:[%s4861_s12 + $0x38] sm:$0xff] %vm562_vm9, %v2946_v13  ;;  %v3057_v32 = vrot.slane %v3049_v59, %v5223_v14 }
 0x69c   : > { %v2698_v28 = vpop.permute.xlu0 %2697 }
 0x69d   : > { %v2863_v22 = vcombine.low %v2696_v48, %v2698_v28 }
 0x69e   : > { %v2716_v62 = vpop.permute.xlu1 %2715 }
 0x69f   : > { %v2877_v33 = vrot.slane %v2863_v22, %v5223_v14 }
 0x6a0   : > { %v2718_v17 = vpop.permute.xlu0 %2717 }
 0x6a1   : > { %v2878_v3 = vcombine.low %v2870_v37, %v2877_v33  ;;  %v2981_v58 = vcombine.low %v2716_v62, %v2718_v17 }
 0x6a2   : > { %v2736_v25 = vpop.permute.xlu1 %2735 }
 0x6a3   : > { %3390 = vst.msk [vmem:[%s4861_s12 + $0x18] sm:$0xff] %vm562_vm9, %v2878_v3  ;;  %v2989_v34 = vrot.slane %v2981_v58, %v5223_v14 }
 0x6a4   : > { %v2738_v31 = vpop.permute.xlu0 %2737 }
 0x6a5   : > { %v3050_v19 = vcombine.low %v2736_v25, %v2738_v31 }
 0x6a6   : > { %v2740_v9 = vpop.permute.xlu1 %2739 }
 0x6a7   : > { %v3064_v6 = vrot.slane %v3050_v19, %v5223_v14 }
 0x6a8   : > { %v2742_v12 = vpop.permute.xlu0 %2741 }
 0x6a9   : > { %v3065_v36 = vcombine.low %v3057_v32, %v3064_v6  ;;  %v3066_v0 = vcombine.low %v2740_v9, %v2742_v12 }
 0x6aa   : > { %v2720_v30 = vpop.permute.xlu1 %2719 }
 0x6ab   : > { %3401 = vst.msk [vmem:[%s4861_s12 + $0x70] sm:$0xff] %vm562_vm9, %v3065_v36  ;;  %v3074_v63 = vrot.slane %v3066_v0, %v5223_v14 }
 0x6ac   : > { %v2722_v20 = vpop.permute.xlu0 %2721 }
 0x6ad   : > { %v2982_v41 = vcombine.low %v2720_v30, %v2722_v20 }
 0x6ae   : > { %v2724_v10 = vpop.permute.xlu1 %2723 }
 0x6af   : > { %v2996_v44 = vrot.slane %v2982_v41, %v5223_v14 }
 0x6b0   : > { %v2726_v47 = vpop.permute.xlu0 %2725 }
 0x6b1   : > { %v2997_v39 = vcombine.low %v2989_v34, %v2996_v44  ;;  %v2998_v4 = vcombine.low %v2724_v10, %v2726_v47 }
 0x6b2   : > { %v2744_v29 = vpop.permute.xlu1 %2743 }
 0x6b3   : > { %3397 = vst.msk [vmem:[%s4861_s12 + $0x50] sm:$0xff] %vm562_vm9, %v2997_v39  ;;  %v3006_v54 = vrot.slane %v2998_v4, %v5223_v14 }
 0x6b4   : > { %v2746_v23 = vpop.permute.xlu0 %2745 }
 0x6b5   : > { %v3067_v2 = vcombine.low %v2744_v29, %v2746_v23 }
 0x6b6   : > { %v2764_v56 = vpop.permute.xlu1 %2763 }
 0x6b7   : > { %v3081_v57 = vrot.slane %v3067_v2, %v5223_v14 }
 0x6b8   : > { %v2766_v5 = vpop.permute.xlu0 %2765 }
 0x6b9   : > { %v3082_v40 = vcombine.low %v3074_v63, %v3081_v57  ;;  %v3185_v7 = vcombine.low %v2764_v56, %v2766_v5 }
 0x6ba   : > { %v2728_v1 = vpop.permute.xlu1 %2727 }
 0x6bb   : > { %3402 = vst.msk [vmem:[%s4861_s12 + $0x78] sm:$0xff] %vm562_vm9, %v3082_v40  ;;  %v3193_v43 = vrot.slane %v3185_v7, %v5223_v14 }
 0x6bc   : > { %v2730_v38 = vpop.permute.xlu0 %2729 }
 0x6bd   : > { %v2999_v50 = vcombine.low %v2728_v1, %v2730_v38 }
 0x6be   : > { %v2748_v11 = vpop.permute.xlu1 %2747 }
 0x6bf   : > { %v3013_v35 = vrot.slane %v2999_v50, %v5223_v14 }
 0x6c0   : > { %v2750_v61 = vpop.permute.xlu0 %2749 }
 0x6c1   : > { %v3014_v24 = vcombine.low %v3006_v54, %v3013_v35  ;;  %v3117_v18 = vcombine.low %v2748_v11, %v2750_v61 }
 0x6c2   : > { %v2768_v49 = vpop.permute.xlu1 %2767 }
 0x6c3   : > { %3398 = vst.msk [vmem:[%s4861_s12 + $0x58] sm:$0xff] %vm562_vm9, %v3014_v24  ;;  %v3125_v26 = vrot.slane %v3117_v18, %v5223_v14 }
 0x6c4   : > { %v2770_v42 = vpop.permute.xlu0 %2769 }
 0x6c5   : > { %v3186_v21 = vcombine.low %v2768_v49, %v2770_v42 }
 0x6c6   : > { %v2772_v52 = vpop.permute.xlu1 %2771 }
 0x6c7   : > { %v3200_v27 = vrot.slane %v3186_v21, %v5223_v14 }
 0x6c8   : > { %v2774_v60 = vpop.permute.xlu0 %2773 }
 0x6c9   : > { %v3201_v51 = vcombine.low %v3193_v43, %v3200_v27  ;;  %v3202_v46 = vcombine.low %v2772_v52, %v2774_v60 }
 0x6ca   : > { %v2752_v55 = vpop.permute.xlu1 %2751 }
 0x6cb   : > { %3409 = vst.msk [vmem:[%s4861_s12 + $0xb0] sm:$0xff] %vm562_vm9, %v3201_v51  ;;  %v3210_v37 = vrot.slane %v3202_v46, %v5223_v14 }
 0x6cc   : > { %v2754_v16 = vpop.permute.xlu0 %2753 }
 0x6cd   : > { %v3118_v15 = vcombine.low %v2752_v55, %v2754_v16 }
 0x6ce   : > { %v2756_v8 = vpop.permute.xlu1 %2755 }
 0x6cf   : > { %v3132_v45 = vrot.slane %v3118_v15, %v5223_v14 }
 0x6d0   : > { %v2758_v53 = vpop.permute.xlu0 %2757 }
 0x6d1   : > { %v3133_v13 = vcombine.low %v3125_v26, %v3132_v45  ;;  %v3134_v59 = vcombine.low %v2756_v8, %v2758_v53 }
 0x6d2   : > { %v2776_v48 = vpop.permute.xlu1 %2775 }
 0x6d3   : > { %3405 = vst.msk [vmem:[%s4861_s12 + $0x90] sm:$0xff] %vm562_vm9, %v3133_v13  ;;  %v3142_v32 = vrot.slane %v3134_v59, %v5223_v14 }
 0x6d4   : > { %v2778_v28 = vpop.permute.xlu0 %2777 }
 0x6d5   : > { %v3203_v22 = vcombine.low %v2776_v48, %v2778_v28 }
 0x6d6   : > { %v2796_v62 = vpop.permute.xlu1 %2795 }
 0x6d7   : > { %v3217_v33 = vrot.slane %v3203_v22, %v5223_v14 }
 0x6d8   : > { %v2798_v17 = vpop.permute.xlu0 %2797 }
 0x6d9   : > { %v3218_v3 = vcombine.low %v3210_v37, %v3217_v33  ;;  %v3321_v58 = vcombine.low %v2796_v62, %v2798_v17 }
 0x6da   : > { %v2760_v25 = vpop.permute.xlu1 %2759 }
 0x6db   : > { %3410 = vst.msk [vmem:[%s4861_s12 + $0xb8] sm:$0xff] %vm562_vm9, %v3218_v3  ;;  %v3329_v34 = vrot.slane %v3321_v58, %v5223_v14 }
 0x6dc   : > { %v2762_v31 = vpop.permute.xlu0 %2761 }
 0x6dd   : > { %v3135_v19 = vcombine.low %v2760_v25, %v2762_v31 }
 0x6de   : > { %v2780_v9 = vpop.permute.xlu1 %2779 }
 0x6df   : > { %v3149_v6 = vrot.slane %v3135_v19, %v5223_v14 }
 0x6e0   : > { %v2782_v12 = vpop.permute.xlu0 %2781 }
 0x6e1   : > { %v3150_v36 = vcombine.low %v3142_v32, %v3149_v6  ;;  %v3253_v0 = vcombine.low %v2780_v9, %v2782_v12 }
 0x6e2   : > { %v2800_v30 = vpop.permute.xlu1 %2799 }
 0x6e3   : > { %3406 = vst.msk [vmem:[%s4861_s12 + $0x98] sm:$0xff] %vm562_vm9, %v3150_v36  ;;  %v3261_v63 = vrot.slane %v3253_v0, %v5223_v14 }
 0x6e4   : > { %v2802_v20 = vpop.permute.xlu0 %2801 }
 0x6e5   : > { %v3322_v41 = vcombine.low %v2800_v30, %v2802_v20 }
 0x6e6   : > { %v2804_v10 = vpop.permute.xlu1 %2803 }
 0x6e7   : > { %v3336_v44 = vrot.slane %v3322_v41, %v5223_v14 }
 0x6e8   : > { %v2806_v47 = vpop.permute.xlu0 %2805 }
 0x6e9   : > { %v3337_v39 = vcombine.low %v3329_v34, %v3336_v44  ;;  %v3338_v54 = vcombine.low %v2804_v10, %v2806_v47 }
 0x6ea   : > { %v2784_v29 = vpop.permute.xlu1 %2783 }
 0x6eb   : > { %3417 = vst.msk [vmem:[%s4861_s12 + $0xf0] sm:$0xff] %vm562_vm9, %v3337_v39  ;;  %v3346_v42 = vrot.slane %v3338_v54, %v5223_v14 }
 0x6ec   : > { %v2786_v23 = vpop.permute.xlu0 %2785 }
 0x6ed   : > { %v3254_v2 = vcombine.low %v2784_v29, %v2786_v23 }
 0x6ee   : > { %v2788_v56 = vpop.permute.xlu1 %2787 }
 0x6ef   : > { %v3268_v57 = vrot.slane %v3254_v2, %v5223_v14 }
 0x6f0   : > { %v2790_v5 = vpop.permute.xlu0 %2789 }
 0x6f1   : > { %v3269_v40 = vcombine.low %v3261_v63, %v3268_v57  ;;  %v3270_v4 = vcombine.low %v2788_v56, %v2790_v5 }
 0x6f2   : > { %v2792_v1 = vpop.permute.xlu1 %2791 }
 0x6f3   : > { %3413 = vst.msk [vmem:[%s4861_s12 + $0xd0] sm:$0xff] %vm562_vm9, %v3269_v40  ;;  %v3278_v35 = vrot.slane %v3270_v4, %v5223_v14 }
 0x6f4   : > { %v2794_v38 = vpop.permute.xlu0 %2793 }
 0x6f5   : > { %v3271_v50 = vcombine.low %v2792_v1, %v2794_v38 }
 0x6f6   : > { %v2808_v61 = vpop.permute.xlu1 %2807 }
 0x6f7   : > { %v3285_v11 = vrot.slane %v3271_v50, %v5223_v14 }
 0x6f8   : > { %v2810_v24 = vpop.permute.xlu0 %2809 }
 0x6f9   : > { %v3286_v7 = vcombine.low %v3278_v35, %v3285_v11  ;;  %v3339_v49 = vcombine.low %v2808_v61, %v2810_v24 }
 0x6fb   : > { %3414 = vst.msk [vmem:[%s4861_s12 + $0xd8] sm:$0xff] %vm562_vm9, %v3286_v7  ;;  %v3353_v21 = vrot.slane %v3339_v49, %v5223_v14 }
 0x6fd   : > { %v3354_v43 = vcombine.low %v3346_v42, %v3353_v21 }
 0x6ff   : > { %3418 = vst.msk [vmem:[%s4861_s12 + $0xf8] sm:$0xff] %vm562_vm9, %v3354_v43 }
 0x700 PF: > { %s17_s24 = sadd.s32 1, %s3645_s24  }
 0x701   : > { %p14_p4 = scmp.ge.s32.totalorder %s17_s24, 4  }
 0x703   :  { %16 = sbr.rel (!%p14_p4) target bundleno = 1 (0x1), region = 78 }

</bundles_post_ra>
